<compile_context>
chip_gen: v5e
topology: v5e:2x2
jax: 0.10.0
libtpu: 0.0.40
codegen_flags: <defaults>
</compile_context>

<pallas_src>
import jax
import jax.numpy as jnp
from jax.experimental import pallas as pl
from jax.experimental.pallas import tpu as pltpu

BN_EPS = 1e-5     # torch.nn.BatchNorm1d default eps
GEN_EPS = 1e-7    # GENConv message eps


def deep_layer_kernel(x_dst_ref, em_ref, adj_ref,
                      bn0_s_ref, bn0_t_ref,
                      w1_ref, b1_ref,
                      w2_ref, b2_ref,
                      wcat_ref, bias_ref,
                      out_ref, acc_ref):
    k = pl.program_id(1)

    @pl.when(k == 0)
    def _init():
        acc_ref[...] = jnp.zeros_like(acc_ref)

    # ---- steady state: one fused bf16 MXU matmul-accumulate --------------------
    # acc[:, :C] += adj @ e        (softmax denominator)
    # acc[:, C:] += adj @ (e*m)    (softmax numerator)
    acc_ref[...] += jnp.dot(adj_ref[...], em_ref[...],
                            preferred_element_type=jnp.float32)

    # ---- finalize: softmax aggregate, GENConv MLP, residual + encoder ----------
    @pl.when(k == pl.num_programs(1) - 1)
    def _finalize():
        C = x_dst_ref.shape[1]
        x_d = x_dst_ref[...]
        h_d = jnp.maximum(x_d * bn0_s_ref[...] + bn0_t_ref[...], 0.0)

        acc = acc_ref[...]
        denom = acc[:, :C]
        num = acc[:, C:]
        inv = pl.reciprocal(jnp.maximum(denom, 1e-20), approx=True)   # EUP slot
        agg = jnp.where(denom > 0.0, num * inv, 0.0)   # zero in-degree -> 0 (PyG)

        # GENConv MLP with BN1/BN2 folded into the (bf16) weights.
        z = (agg + h_d).astype(jnp.bfloat16)
        z = jnp.maximum(
            jnp.dot(z, w1_ref[...], preferred_element_type=jnp.float32)
            + b1_ref[...], 0.0)
        z = jnp.maximum(
            jnp.dot(z.astype(jnp.bfloat16), w2_ref[...],
                    preferred_element_type=jnp.float32)
            + b2_ref[...], 0.0)

        # fused residual + encoder:
        #   out = (x + z@w3 + b3) @ Wenc + benc
        #       = [x | z] @ vstack([Wenc, w3@Wenc]) + (b3@Wenc + benc)
        xz = jnp.concatenate([x_d.astype(jnp.bfloat16), z.astype(jnp.bfloat16)],
                             axis=-1)
        out = jnp.dot(xz, wcat_ref[...], preferred_element_type=jnp.float32) \
            + bias_ref[...]
        out_ref[...] = out.astype(out_ref.dtype)


def fold_bn(gamma, beta, rm, rv):
    """Fold eval-mode BatchNorm1d into per-channel scale/shift (1, C)."""
    s = gamma / jnp.sqrt(rv + BN_EPS)
    t = beta - rm * s
    return s.reshape(1, -1), t.reshape(1, -1)


def _pick_tiles(N, tm_req, tk_req):
    tm = min(tm_req, N)
    tk = min(tk_req, N)
    # keep >=2 row tiles when possible so the "parallel" axis shards across v7x's 2 TCs
    if N // tm < 2 and N % 2 == 0 and (N // 2) % 8 == 0 and N // 2 >= 8:
        tm = N // 2
    return tm, tk


def deep_layer_forward(x, edge_index, p, out_channels, *, tm=512, tk=2048):
    N, C = x.shape
    H = p["w1"].shape[1]
    O = out_channels
    O_pad = ((max(O, 128) + 127) // 128) * 128        # lane-dense encoder output

    tm, tk = _pick_tiles(N, tm, tk)
    assert N % tm == 0 and N % tk == 0, "toy wrapper assumes N divisible by tile sizes"
    assert tm % 8 == 0 and (tk % 128 == 0 or tk == N), "tile sizes must respect (8,128)"

    src, dst = edge_index[0], edge_index[1]
    # dense adjacency glue: adj[dst, src] = edge multiplicity (small ints, exact in bf16)
    adj = jnp.zeros((N, N), jnp.float32).at[dst, src].add(1.0).astype(jnp.bfloat16)

    bn0_s, bn0_t = fold_bn(p["bn0_gamma"], p["bn0_beta"], p["bn0_rm"], p["bn0_rv"])
    bn1_s, bn1_t = fold_bn(p["bn1_gamma"], p["bn1_beta"], p["bn1_rm"], p["bn1_rv"])
    bn2_s, bn2_t = fold_bn(p["bn2_gamma"], p["bn2_beta"], p["bn2_rm"], p["bn2_rv"])

    # ---- hoisted source-side message block:  EM = [exp(m - gmax) | exp(m - gmax)*m] --------
    h_all = jnp.maximum(x * bn0_s + bn0_t, 0.0)
    m_all = h_all + GEN_EPS
    gmax = jnp.max(m_all, axis=0, keepdims=True)      # global per-channel shift (shift-inv.)
    e_all = jnp.exp(m_all - gmax)
    em = jnp.concatenate([e_all, e_all * m_all], axis=-1).astype(jnp.bfloat16)   # (N, 2C)

    # ---- fold BN1/BN2 into the MLP weights (eval mode), store bf16 --------------------------
    w1f = (p["w1"] * bn1_s).astype(jnp.bfloat16)                      # (C, H)
    b1f = (p["b1"].reshape(1, -1) * bn1_s + bn1_t)                    # (1, H) f32
    w2f = (p["w2"] * bn2_s).astype(jnp.bfloat16)                      # (H, H)
    b2f = (p["b2"].reshape(1, -1) * bn2_s + bn2_t)                    # (1, H) f32

    # ---- fold last GENConv linear + residual into one encoder matmul (padded lane-dense) ----
    w3enc = p["w3"] @ p["wenc"]                                       # (H, O)
    bias = (p["b3"] @ p["wenc"] + p["benc"]).reshape(1, -1)           # (1, O)
    wcat = jnp.zeros((C + H, O_pad), jnp.float32)
    wcat = wcat.at[:C, :O].set(p["wenc"]).at[C:, :O].set(w3enc).astype(jnp.bfloat16)
    bias_p = jnp.zeros((1, O_pad), jnp.float32).at[:, :O].set(bias)

    grid = (N // tm, N // tk)
    full = lambda i, k: (0, 0)

    # VMEM budget: double-buffered streams + scratch + resident weights, clamped <=48 MiB (v7x-safe).
    stream_bytes = 2 * (tm * tk * 2 + tk * 2 * C * 2 + tm * C * 4 + tm * O_pad * 2)
    resident_bytes = tm * 2 * C * 4 + (C * H + H * H + (C + H) * O_pad) * 2 \
        + (2 * C + 2 * H + O_pad) * 4
    vmem_limit = int(min(48 * 1024 * 1024,
                         max(32 * 1024 * 1024, 2 * (stream_bytes + resident_bytes))))

    mlp_flops = 2 * N * (C * H + H * H + (C + H) * O_pad)
    cost = pl.CostEstimate(
        flops=2 * N * N * (2 * C) + mlp_flops,
        transcendentals=N * C,
        bytes_accessed=(N * N * 2 + N * 2 * C * 2 + N * C * 4 + N * O_pad * 2
                        + 2 * (C * H + H * H + (C + H) * O_pad)),
    )

    out = pl.pallas_call(
        deep_layer_kernel,
        out_shape=jax.ShapeDtypeStruct((N, O_pad), jnp.bfloat16),
        grid_spec=pltpu.PrefetchScalarGridSpec(
            num_scalar_prefetch=0,
            grid=grid,
            in_specs=[
                pl.BlockSpec((tm, C), lambda i, k: (i, 0)),        # x, dst rows (f32)
                pl.BlockSpec((tk, 2 * C), lambda i, k: (k, 0)),    # EM = [e | e*m] (bf16)
                pl.BlockSpec((tm, tk), lambda i, k: (i, k)),       # adj tile (bf16)
                pl.BlockSpec((1, C), full),                        # bn0 scale
                pl.BlockSpec((1, C), full),                        # bn0 shift
                pl.BlockSpec((C, H), full),                        # w1 * bn1_s (bf16)
                pl.BlockSpec((1, H), full),                        # b1 folded (f32)
                pl.BlockSpec((H, H), full),                        # w2 * bn2_s (bf16)
                pl.BlockSpec((1, H), full),                        # b2 folded (f32)
                pl.BlockSpec((C + H, O_pad), full),                # [wenc; w3@wenc] (bf16)
                pl.BlockSpec((1, O_pad), full),                    # b3@wenc + benc (f32)
            ],
            out_specs=pl.BlockSpec((tm, O_pad), lambda i, k: (i, 0)),
            scratch_shapes=[pltpu.VMEM((tm, 2 * C), jnp.float32)],  # [denom | num]
        ),
        compiler_params=pltpu.CompilerParams(
            dimension_semantics=("parallel", "arbitrary"),
            vmem_limit_bytes=vmem_limit,
        ),
        cost_estimate=cost,
    )(x, em, adj, bn0_s, bn0_t, w1f, b1f, w2f, b2f, wcat, bias_p)

    return out[:, :O].astype(jnp.float32)


def reference_forward(x, edge_index, p, out_channels):
    """Pure-JAX reference mimicking PyG scatter_softmax semantics (edge-list form)."""
    N, C = x.shape
    bn0_s, bn0_t = fold_bn(p["bn0_gamma"], p["bn0_beta"], p["bn0_rm"], p["bn0_rv"])
    bn1_s, bn1_t = fold_bn(p["bn1_gamma"], p["bn1_beta"], p["bn1_rm"], p["bn1_rv"])
    bn2_s, bn2_t = fold_bn(p["bn2_gamma"], p["bn2_beta"], p["bn2_rm"], p["bn2_rv"])

    h = jnp.maximum(x * bn0_s + bn0_t, 0.0)
    src, dst = edge_index[0], edge_index[1]
    msg = jnp.maximum(h, 0.0)[src] + GEN_EPS                       # (E, C)
    mx = jax.ops.segment_max(msg, dst, num_segments=N)
    mx = jnp.where(jnp.isfinite(mx), mx, 0.0)
    w = jnp.exp(msg - mx[dst])
    den = jax.ops.segment_sum(w, dst, num_segments=N)
    alpha = w / den[dst]
    agg = jax.ops.segment_sum(alpha * msg, dst, num_segments=N)

    z = agg + h
    z = jnp.maximum((z @ p["w1"] + p["b1"]) * bn1_s + bn1_t, 0.0)
    z = jnp.maximum((z @ p["w2"] + p["b2"]) * bn2_s + bn2_t, 0.0)
    z = z @ p["w3"] + p["b3"]
    y = x + z
    return y @ p["wenc"] + p["benc"]


def init_params(key, C, O):
    H = 2 * C  # GENConv MLP expansion=2
    ks = jax.random.split(key, 20)

    def nrm(k, shape, scale=0.1):
        return scale * jax.random.normal(k, shape, jnp.float32)

    def pos(k, shape):
        return jax.random.uniform(k, shape, jnp.float32, 0.5, 1.5)

    return {
        # outer BatchNorm1d(C) of DeepGCNLayer
        "bn0_gamma": pos(ks[0], (C,)), "bn0_beta": nrm(ks[1], (C,)),
        "bn0_rm": nrm(ks[2], (C,)),    "bn0_rv": pos(ks[3], (C,)),
        # GENConv MLP: Linear(C,2C) -> BN -> ReLU -> Linear(2C,2C) -> BN -> ReLU -> Linear(2C,C)
        "w1": nrm(ks[4], (C, H)),  "b1": nrm(ks[5], (H,)),
        "bn1_gamma": pos(ks[6], (H,)), "bn1_beta": nrm(ks[7], (H,)),
        "bn1_rm": nrm(ks[8], (H,)),    "bn1_rv": pos(ks[9], (H,)),
        "w2": nrm(ks[10], (H, H)), "b2": nrm(ks[11], (H,)),
        "bn2_gamma": pos(ks[12], (H,)), "bn2_beta": nrm(ks[13], (H,)),
        "bn2_rm": nrm(ks[14], (H,)),    "bn2_rv": pos(ks[15], (H,)),
        "w3": nrm(ks[16], (H, C)), "b3": nrm(ks[17], (C,)),
        # encoder Linear(C, O)
        "wenc": nrm(ks[18], (C, O)), "benc": nrm(ks[19], (O,)),
    }


if __name__ == "__main__":
    N, C, O, E = 256, 32, 16, 1024        # nodes, in_channels, out_channels, edges
    key = jax.random.PRNGKey(0)
    kx, ke, kp = jax.random.split(key, 3)

    x = jax.random.normal(kx, (N, C), jnp.float32)
    edge_index = jax.random.randint(ke, (2, E), 0, N)   # [src; dst], PyG convention
    params = init_params(kp, C, O)

    out = deep_layer_forward(x, edge_index, params, O)
    out = jax.block_until_ready(out)

    ref = reference_forward(x, edge_index, params, O)
    err = float(jnp.max(jnp.abs(out - ref)))
    scale = float(jnp.max(jnp.abs(ref)))
    # end-to-end bf16 path (adjacency, messages, MLP weights/acts, output): ~2-3% rel headroom
    tol = max(8e-2, 3e-2 * scale)
    if not (err < tol):
        raise AssertionError(f"Pallas kernel mismatch vs reference: max abs err={err}, tol={tol}")

    print("KERNEL_OK")
</pallas_src>

<mosaic_0001>
module attributes {stable_mosaic.version = 11 : i64} {
  func.func @deep_layer_kernel(%arg0: i32, %arg1: i32, %arg2: memref<128x32xf32, #tpu.memory_space<vmem>>, %arg3: memref<256x64xbf16, #tpu.memory_space<vmem>>, %arg4: memref<128x256xbf16, #tpu.memory_space<vmem>>, %arg5: memref<1x32xf32, #tpu.memory_space<vmem>>, %arg6: memref<1x32xf32, #tpu.memory_space<vmem>>, %arg7: memref<32x64xbf16, #tpu.memory_space<vmem>>, %arg8: memref<1x64xf32, #tpu.memory_space<vmem>>, %arg9: memref<64x64xbf16, #tpu.memory_space<vmem>>, %arg10: memref<1x64xf32, #tpu.memory_space<vmem>>, %arg11: memref<96x128xbf16, #tpu.memory_space<vmem>>, %arg12: memref<1x128xf32, #tpu.memory_space<vmem>>, %arg13: memref<128x128xbf16, #tpu.memory_space<vmem>>, %arg14: memref<128x64xf32, #tpu.memory_space<vmem>>) attributes {dimension_semantics = [#tpu.dimension_semantics<parallel>, #tpu.dimension_semantics<arbitrary>], iteration_bounds = array<i64: 2, 1>, scalar_prefetch = 0 : i64, scratch_operands = 1 : i64, tpu.core_type = #tpu.core_type<tc>, window_params = [{transform_indices = @transform_0, window_bounds = array<i64: 128, 32>}, {transform_indices = @transform_1, window_bounds = array<i64: 256, 64>}, {transform_indices = @transform_2, window_bounds = array<i64: 128, 256>}, {pipeline_mode = #tpu.pipeline_mode<synchronous>, transform_indices = @transform_3, window_bounds = array<i64: 1, 32>}, {pipeline_mode = #tpu.pipeline_mode<synchronous>, transform_indices = @transform_4, window_bounds = array<i64: 1, 32>}, {pipeline_mode = #tpu.pipeline_mode<synchronous>, transform_indices = @transform_5, window_bounds = array<i64: 32, 64>}, {pipeline_mode = #tpu.pipeline_mode<synchronous>, transform_indices = @transform_6, window_bounds = array<i64: 1, 64>}, {pipeline_mode = #tpu.pipeline_mode<synchronous>, transform_indices = @transform_7, window_bounds = array<i64: 64, 64>}, {pipeline_mode = #tpu.pipeline_mode<synchronous>, transform_indices = @transform_8, window_bounds = array<i64: 1, 64>}, {pipeline_mode = #tpu.pipeline_mode<synchronous>, transform_indices = @transform_9, window_bounds = array<i64: 96, 128>}, {pipeline_mode = #tpu.pipeline_mode<synchronous>, transform_indices = @transform_10, window_bounds = array<i64: 1, 128>}, {transform_indices = @transform_11, window_bounds = array<i64: 128, 128>}]} {
    %c0_i32 = arith.constant 0 : i32
    %0 = arith.cmpi eq, %arg1, %c0_i32 : i32
    %1 = arith.extui %0 : i1 to i32
    %c0_i32_0 = arith.constant 0 : i32
    %2 = arith.cmpi ne, %1, %c0_i32_0 : i32
    scf.if %2 {
      %cst_10 = arith.constant 0.000000e+00 : f32
      %12 = vector.broadcast %cst_10 : f32 to vector<128x64xf32>
      %c0_11 = arith.constant 0 : index
      %c0_12 = arith.constant 0 : index
      %13 = vector.load %arg14[%c0_11, %c0_12] : memref<128x64xf32, #tpu.memory_space<vmem>>, vector<128x64xf32>
      tpu.vector_store %arg14[%c0_11, %c0_12], %12 {strides = array<i32>} : memref<128x64xf32, #tpu.memory_space<vmem>>, vector<128x64xf32>,
    } else {
    }
    %c0 = arith.constant 0 : index
    %c0_1 = arith.constant 0 : index
    %3 = vector.load %arg14[%c0, %c0_1] : memref<128x64xf32, #tpu.memory_space<vmem>>, vector<128x64xf32>
    %c0_2 = arith.constant 0 : index
    %c0_3 = arith.constant 0 : index
    %4 = vector.load %arg4[%c0_2, %c0_3] : memref<128x256xbf16, #tpu.memory_space<vmem>>, vector<128x256xbf16>
    %c0_4 = arith.constant 0 : index
    %c0_5 = arith.constant 0 : index
    %5 = vector.load %arg3[%c0_4, %c0_5] : memref<256x64xbf16, #tpu.memory_space<vmem>>, vector<256x64xbf16>
    %cst = arith.constant dense<0.000000e+00> : vector<128x64xf32>
    %6 = tpu.matmul %4, %5, %cst {dimension_numbers = #tpu.dot_dimension_numbers<[1], [0], [0], [1], [0, 0, 1, 1], [], []>} : vector<128x256xbf16>, vector<256x64xbf16>, vector<128x64xf32> -> vector<128x64xf32>
    %7 = arith.addf %3, %6 : vector<128x64xf32>
    %c0_6 = arith.constant 0 : index
    %c0_7 = arith.constant 0 : index
    %8 = vector.load %arg14[%c0_6, %c0_7] : memref<128x64xf32, #tpu.memory_space<vmem>>, vector<128x64xf32>
    tpu.vector_store %arg14[%c0_6, %c0_7], %7 {strides = array<i32>} : memref<128x64xf32, #tpu.memory_space<vmem>>, vector<128x64xf32>,
    %c0_i32_8 = arith.constant 0 : i32
    %9 = arith.cmpi eq, %arg1, %c0_i32_8 : i32
    %10 = arith.extui %9 : i1 to i32
    %c0_i32_9 = arith.constant 0 : i32
    %11 = arith.cmpi ne, %10, %c0_i32_9 : i32
    scf.if %11 {
      %c0_10 = arith.constant 0 : index
      %c0_11 = arith.constant 0 : index
      %12 = vector.load %arg2[%c0_10, %c0_11] : memref<128x32xf32, #tpu.memory_space<vmem>>, vector<128x32xf32>
      %c0_12 = arith.constant 0 : index
      %c0_13 = arith.constant 0 : index
      %13 = vector.load %arg5[%c0_12, %c0_13] : memref<1x32xf32, #tpu.memory_space<vmem>>, vector<1x32xf32>
      %14 = vector.broadcast %13 : vector<1x32xf32> to vector<128x32xf32>
      %15 = arith.mulf %12, %14 : vector<128x32xf32>
      %c0_14 = arith.constant 0 : index
      %c0_15 = arith.constant 0 : index
      %16 = vector.load %arg6[%c0_14, %c0_15] : memref<1x32xf32, #tpu.memory_space<vmem>>, vector<1x32xf32>
      %17 = vector.broadcast %16 : vector<1x32xf32> to vector<128x32xf32>
      %18 = arith.addf %15, %17 : vector<128x32xf32>
      %cst_16 = arith.constant 0.000000e+00 : f32
      %19 = vector.broadcast %cst_16 : f32 to vector<128x32xf32>
      %20 = arith.maximumf %18, %19 : vector<128x32xf32>
      %c0_17 = arith.constant 0 : index
      %c0_18 = arith.constant 0 : index
      %21 = vector.load %arg14[%c0_17, %c0_18] : memref<128x64xf32, #tpu.memory_space<vmem>>, vector<128x64xf32>
      %22 = vector.extract_strided_slice %21 {offsets = [0, 0], sizes = [128, 32], strides = [1, 1]} : vector<128x64xf32> to vector<128x32xf32>
      %23 = vector.extract_strided_slice %21 {offsets = [0, 32], sizes = [128, 32], strides = [1, 1]} : vector<128x64xf32> to vector<128x32xf32>
      %cst_19 = arith.constant 9.99999968E-21 : f32
      %24 = vector.broadcast %cst_19 : f32 to vector<128x32xf32>
      %25 = arith.maximumf %22, %24 : vector<128x32xf32>
      %26 = tpu.reciprocal %25 {approx = true} : vector<128x32xf32> -> vector<128x32xf32>
      %cst_20 = arith.constant 0.000000e+00 : f32
      %27 = vector.broadcast %cst_20 : f32 to vector<128x32xf32>
      %28 = arith.cmpf ogt, %22, %27 : vector<128x32xf32>
      %29 = arith.mulf %23, %26 : vector<128x32xf32>
      %cst_21 = arith.constant 0.000000e+00 : f32
      %30 = vector.broadcast %cst_21 : f32 to vector<128x32xf32>
      %31 = arith.select %28, %29, %30 : vector<128x32xi1>, vector<128x32xf32>
      %32 = arith.addf %31, %20 : vector<128x32xf32>
      %33 = arith.truncf %32 : vector<128x32xf32> to vector<128x32xbf16>
      %c0_22 = arith.constant 0 : index
      %c0_23 = arith.constant 0 : index
      %34 = vector.load %arg7[%c0_22, %c0_23] : memref<32x64xbf16, #tpu.memory_space<vmem>>, vector<32x64xbf16>
      %cst_24 = arith.constant dense<0.000000e+00> : vector<128x64xf32>
      %35 = tpu.matmul %33, %34, %cst_24 {dimension_numbers = #tpu.dot_dimension_numbers<[1], [0], [0], [1], [0, 0, 1, 1], [], []>} : vector<128x32xbf16>, vector<32x64xbf16>, vector<128x64xf32> -> vector<128x64xf32>
      %c0_25 = arith.constant 0 : index
      %c0_26 = arith.constant 0 : index
      %36 = vector.load %arg8[%c0_25, %c0_26] : memref<1x64xf32, #tpu.memory_space<vmem>>, vector<1x64xf32>
      %37 = vector.broadcast %36 : vector<1x64xf32> to vector<128x64xf32>
      %38 = arith.addf %35, %37 : vector<128x64xf32>
      %cst_27 = arith.constant 0.000000e+00 : f32
      %39 = vector.broadcast %cst_27 : f32 to vector<128x64xf32>
      %40 = arith.maximumf %38, %39 : vector<128x64xf32>
      %41 = arith.truncf %40 : vector<128x64xf32> to vector<128x64xbf16>
      %c0_28 = arith.constant 0 : index
      %c0_29 = arith.constant 0 : index
      %42 = vector.load %arg9[%c0_28, %c0_29] : memref<64x64xbf16, #tpu.memory_space<vmem>>, vector<64x64xbf16>
      %cst_30 = arith.constant dense<0.000000e+00> : vector<128x64xf32>
      %43 = tpu.matmul %41, %42, %cst_30 {dimension_numbers = #tpu.dot_dimension_numbers<[1], [0], [0], [1], [0, 0, 1, 1], [], []>} : vector<128x64xbf16>, vector<64x64xbf16>, vector<128x64xf32> -> vector<128x64xf32>
      %c0_31 = arith.constant 0 : index
      %c0_32 = arith.constant 0 : index
      %44 = vector.load %arg10[%c0_31, %c0_32] : memref<1x64xf32, #tpu.memory_space<vmem>>, vector<1x64xf32>
      %45 = vector.broadcast %44 : vector<1x64xf32> to vector<128x64xf32>
      %46 = arith.addf %43, %45 : vector<128x64xf32>
      %cst_33 = arith.constant 0.000000e+00 : f32
      %47 = vector.broadcast %cst_33 : f32 to vector<128x64xf32>
      %48 = arith.maximumf %46, %47 : vector<128x64xf32>
      %49 = arith.truncf %12 : vector<128x32xf32> to vector<128x32xbf16>
      %50 = arith.truncf %48 : vector<128x64xf32> to vector<128x64xbf16>
      %51 = tpu.concatenate %49, %50 in 1 : vector<128x32xbf16>, vector<128x64xbf16> -> vector<128x96xbf16>
      %c0_34 = arith.constant 0 : index
      %c0_35 = arith.constant 0 : index
      %52 = vector.load %arg11[%c0_34, %c0_35] : memref<96x128xbf16, #tpu.memory_space<vmem>>, vector<96x128xbf16>
      %cst_36 = arith.constant dense<0.000000e+00> : vector<128x128xf32>
      %53 = tpu.matmul %51, %52, %cst_36 {dimension_numbers = #tpu.dot_dimension_numbers<[1], [0], [0], [1], [0, 0, 1, 1], [], []>} : vector<128x96xbf16>, vector<96x128xbf16>, vector<128x128xf32> -> vector<128x128xf32>
      %c0_37 = arith.constant 0 : index
      %c0_38 = arith.constant 0 : index
      %54 = vector.load %arg12[%c0_37, %c0_38] : memref<1x128xf32, #tpu.memory_space<vmem>>, vector<1x128xf32>
      %55 = vector.broadcast %54 : vector<1x128xf32> to vector<128x128xf32>
      %56 = arith.addf %53, %55 : vector<128x128xf32>
      %57 = arith.truncf %56 : vector<128x128xf32> to vector<128x128xbf16>
      %c0_39 = arith.constant 0 : index
      %c0_40 = arith.constant 0 : index
      %58 = vector.load %arg13[%c0_39, %c0_40] : memref<128x128xbf16, #tpu.memory_space<vmem>>, vector<128x128xbf16>
      tpu.vector_store %arg13[%c0_39, %c0_40], %57 {strides = array<i32>} : memref<128x128xbf16, #tpu.memory_space<vmem>>, vector<128x128xbf16>,
    } else {
    }
    return
  }
  func.func @transform_0(%arg0: i32, %arg1: i32) -> (i32, i32) {
    %c0_i32 = arith.constant 0 : i32
    %c0_i32_0 = arith.constant 0 : i32
    return %arg0, %c0_i32 : i32, i32
  }
  func.func @transform_1(%arg0: i32, %arg1: i32) -> (i32, i32) {
    %c0_i32 = arith.constant 0 : i32
    %c0_i32_0 = arith.constant 0 : i32
    return %arg1, %c0_i32 : i32, i32
  }
  func.func @transform_2(%arg0: i32, %arg1: i32) -> (i32, i32) {
    %c0_i32 = arith.constant 0 : i32
    return %arg0, %arg1 : i32, i32
  }
  func.func @transform_3(%arg0: i32, %arg1: i32) -> (i32, i32) {
    %c0_i32 = arith.constant 0 : i32
    %c0_i32_0 = arith.constant 0 : i32
    %c0_i32_1 = arith.constant 0 : i32
    return %c0_i32, %c0_i32_0 : i32, i32
  }
  func.func @transform_4(%arg0: i32, %arg1: i32) -> (i32, i32) {
    %c0_i32 = arith.constant 0 : i32
    %c0_i32_0 = arith.constant 0 : i32
    %c0_i32_1 = arith.constant 0 : i32
    return %c0_i32, %c0_i32_0 : i32, i32
  }
  func.func @transform_5(%arg0: i32, %arg1: i32) -> (i32, i32) {
    %c0_i32 = arith.constant 0 : i32
    %c0_i32_0 = arith.constant 0 : i32
    %c0_i32_1 = arith.constant 0 : i32
    return %c0_i32, %c0_i32_0 : i32, i32
  }
  func.func @transform_6(%arg0: i32, %arg1: i32) -> (i32, i32) {
    %c0_i32 = arith.constant 0 : i32
    %c0_i32_0 = arith.constant 0 : i32
    %c0_i32_1 = arith.constant 0 : i32
    return %c0_i32, %c0_i32_0 : i32, i32
  }
  func.func @transform_7(%arg0: i32, %arg1: i32) -> (i32, i32) {
    %c0_i32 = arith.constant 0 : i32
    %c0_i32_0 = arith.constant 0 : i32
    %c0_i32_1 = arith.constant 0 : i32
    return %c0_i32, %c0_i32_0 : i32, i32
  }
  func.func @transform_8(%arg0: i32, %arg1: i32) -> (i32, i32) {
    %c0_i32 = arith.constant 0 : i32
    %c0_i32_0 = arith.constant 0 : i32
    %c0_i32_1 = arith.constant 0 : i32
    return %c0_i32, %c0_i32_0 : i32, i32
  }
  func.func @transform_9(%arg0: i32, %arg1: i32) -> (i32, i32) {
    %c0_i32 = arith.constant 0 : i32
    %c0_i32_0 = arith.constant 0 : i32
    %c0_i32_1 = arith.constant 0 : i32
    return %c0_i32, %c0_i32_0 : i32, i32
  }
  func.func @transform_10(%arg0: i32, %arg1: i32) -> (i32, i32) {
    %c0_i32 = arith.constant 0 : i32
    %c0_i32_0 = arith.constant 0 : i32
    %c0_i32_1 = arith.constant 0 : i32
    return %c0_i32, %c0_i32_0 : i32, i32
  }
  func.func @transform_11(%arg0: i32, %arg1: i32) -> (i32, i32) {
    %c0_i32 = arith.constant 0 : i32
    %c0_i32_0 = arith.constant 0 : i32
    return %arg0, %c0_i32 : i32, i32
  }
}

</mosaic_0001>

<bundles_post_ra>
// kernel: tpu_custom_call.1
= control target key start
LH: loop header
LB: loop body
LE: loop exit
PB: predicated region body
PF: predicated region fallthrough
CT: control target
= control target key end

     0   :  { %16 = vsyncpa [#allocation4], 0  ;;  %s2991_s0 = inlined_call_operand.vmem [shape: f32[256,32], index: 0, kind: input, shape index: {}]   ;;  %s2992_s1 = inlined_call_operand.vmem [shape: bf16[256,64], index: 1, kind: input, shape index: {}]   ;;  %s2993_s2 = inlined_call_operand.vmem [shape: bf16[256,256], index: 2, kind: input, shape index: {}]   ;;  %s2994_s3 = inlined_call_operand.vmem [shape: f32[1,32], index: 3, kind: input, shape index: {}]   ;;  %s2995_s4 = inlined_call_operand.vmem [shape: f32[1,32], index: 4, kind: input, shape index: {}]   ;;  %s2996_s5 = inlined_call_operand.vmem [shape: bf16[32,64], index: 5, kind: input, shape index: {}]   ;;  %s2997_s6 = inlined_call_operand.vmem [shape: f32[1,64], index: 6, kind: input, shape index: {}]   ;;  %s2998_s7 = inlined_call_operand.vmem [shape: bf16[64,64], index: 7, kind: input, shape index: {}]   ;;  %s2999_s8 = inlined_call_operand.vmem [shape: f32[1,64], index: 8, kind: input, shape index: {}]   ;;  %s3000_s9 = inlined_call_operand.vmem [shape: bf16[96,128], index: 9, kind: input, shape index: {}]   ;;  %s3001_s10 = inlined_call_operand.vmem [shape: f32[1,128], index: 10, kind: input, shape index: {}]   ;;  %s3002_s11 = inlined_call_operand.hbm [shape: bf16[256,128], index: 11, kind: output, shape index: {}]  }
   0x1   :  { %18 = vsyncpa [#allocation4 + $0x1], 0  ;;  %s2401_s17 = smov 0   ;;  %s2403_s18 = smov 0  }
   0x2   :  { %s2405_s19 = smov 0   ;;  %s2407_s20 = smov 0  }
   0x3   :  { %s2409_s21 = smov 0   ;;  %s2411_s22 = smov 0  }
   0x4 LB: > { %3005 = sst [smem:[#allocation6_spill]] %s2330_s21  ;;  %s1843_s23 = sadd.s32 4294967295, %s2334_s22   ;;  %s2334_s22 = sphi %s2411_s22, %s24_s22   ;;  %s2330_s21 = sphi %s2409_s21, %s3012_s21   ;;  %s2326_s20 = sphi %s2407_s20, %s3011_s20   ;;  %s2322_s19 = sphi %s2405_s19, %s3015_s19   ;;  %s2318_s18 = sphi %s2403_s18, %s3014_s18   ;;  %s2314_s17 = sphi %s2401_s17, %s3013_s17  }
   0x5   : > { %s1844_s24 = sadd.s32 4294967294, %s2334_s22   ;;  %s36_s25 = sadd.s32 1, %s2330_s21 }
   0x6   : > { %s291_s26 = sadd.s32 1, %s2322_s19  ;;  %p38_p0 = scmp.ge.s32.totalorder %s36_s25, 2 }
   0x7   : > { %p301_p1 = scmp.ne.s32.totalorder %s2322_s19, %s2318_s18  ;;  %p302_p2 = scmp.eq.s32.totalorder %s1843_s23, 1 }
   0x8   : > { %p307_p3 = scmp.ne.s32.totalorder %s2318_s18, %s2314_s17  ;;  %s3017_s25 = smov (%p38_p0, %s36_s25), 0 }
   0x9   : > { %3006 = sst [smem:[#allocation7_spill]] %s3017_s25  ;;  %p2441_p4 = por %p302_p2, %p301_p1 }
   0xa   : > { %p308_p5 = scmp.eq.s32.totalorder %s1844_s24, 1  ;;  %s288_s28 = ssub.s32 %s2330_s21, %s3017_s25 }
   0xb   : > { %p1848_p6 = scmp.ge.s32.totalorder %s2334_s22, 1  ;;  %p289_p7 = scmp.eq.s32.totalorder %s288_s28, 0 }
   0xc   : > { %p2448_p8 = por %p308_p5, %p307_p3  ;;  %p383_p9 = scmp.lt.s32.totalorder %s2334_s22, 3 }
   0xd   : > { %s2454_s30 = scalar_select %p289_p7, %s2322_s19, %s291_s26  }
   0xe   : > { %p384_p10 = pnand %p1848_p6, %p383_p9 }
   0xf   : > { %3009 = sst [smem:[#allocation8_spill]] %s2454_s30  ;;  %s1850_s14 = sshll.u32 (!%p384_p10), %s2326_s20, 4 }
  0x10   : > { %387 = sbr.rel (%p384_p10) target bundleno = 1257 (0x4e9), region = 64  ;;  %p439_p11 = scmp.lt.s32.totalorder (!%p384_p10), %s1850_s14, 31 }
  0x11   : > { %s2337_s21 = smov (!%p384_p10), 32   ;;  %s2338_s30 = smov (!%p384_p10), 96  }
  0x12   : > { %s2105_s25 = sshll.u32 (!%p384_p10), %s2326_s20, 6 }
  0x13   : > { %s1736_s28 = scalar_lea.hbm (!%p384_p10), %s3002_s11, %s2105_s25  ;;  %s2276_s25 = scalar_lea.hbm (!%p384_p10), %s3002_s11, 128 }
  0x15   : > { %v2084_v0 = vld [vmem:[%s2992_s1 + $0x38] sm:$0xff]  ;;  %v2083_v2 = vld [vmem:[%s2992_s1 + $0x30] sm:$0xff]  ;;  %v2082_v4 = vld [vmem:[%s2992_s1 + $0x28] sm:$0xff]  ;;  %s3019_s14 = smov (!%p439_p11, %s1850_s14), 31  ;;  %vm468_vm0 = vcmask 523264   ;;  %v2336_v46 = vmov 0.0  }
  0x16   : > { %v2092_v1 = vld [vmem:[%s2992_s1 + $0x78] sm:$0xff]  ;;  %725 = vmatpush.bf16.msra.mxu0 %v2084_v0  ;;  %v2091_v3 = vld [vmem:[%s2992_s1 + $0x70] sm:$0xff]  ;;  %v2090_v5 = vld [vmem:[%s2992_s1 + $0x68] sm:$0xff]  ;;  %s1851_s24 = sshll.u32 %s3019_s14, 3  ;;  %469 = vst.msk [vmem:[#allocation2] sm:$0xff] %vm468_vm0, %v2336_v46  ;;  %vm1199_vm3 = vcmask 261120  }
  0x17   : > { %774 = vmatpush.bf16.msra.mxu1 %v2092_v1  ;;  %v2081_v6 = vld [vmem:[%s2992_s1 + $0x20] sm:$0xff]  ;;  %v2080_v8 = vld [vmem:[%s2992_s1 + $0x18] sm:$0xff]  ;;  %v2079_v10 = vld [vmem:[%s2992_s1 + $0x10] sm:$0xff]  ;;  %s2507_s13 = scalar_lea.vmem %s2993_s2, %s1851_s24  ;;  %470 = vst.msk [vmem:[#allocation2 + $0x8] sm:$0xff] %vm468_vm0, %v2336_v46  ;;  %s2664_s23 = scalar_lea.vmem %s2991_s0, %s1851_s24 }
  0x18   : > { %v2089_v7 = vld [vmem:[%s2992_s1 + $0x60] sm:$0xff]  ;;  %v2088_v9 = vld [vmem:[%s2992_s1 + $0x58] sm:$0xff]  ;;  %v2087_v11 = vld [vmem:[%s2992_s1 + $0x50] sm:$0xff]  ;;  %471 = vst.msk [vmem:[#allocation2 + $0x10] sm:$0xff] %vm468_vm0, %v2336_v46  ;;  %s1739_s24 = sshll.u32 %s1736_s28, 4  ;;  %s1740_s24 = int_to_ptr.hbm [resolvable:$true] %s1739_s24 }
  0x19   : > { %v2078_v12 = vld [vmem:[%s2992_s1 + $0x8] sm:$0xff]  ;;  %v2077_v14 = vld [vmem:[%s2992_s1] sm:$0xff]  ;;  %v1865_v22 = vld [vmem:[%s2507_s13 + $0x10] sm:$0xf]  ;;  %472 = vst.msk [vmem:[#allocation2 + $0x18] sm:$0xff] %vm468_vm0, %v2336_v46 }
  0x1a   : > { %726 = vmatpush.bf16.msra.mxu0 %v2083_v2  ;;  %v2086_v13 = vld [vmem:[%s2992_s1 + $0x48] sm:$0xff]  ;;  %v2085_v15 = vld [vmem:[%s2992_s1 + $0x40] sm:$0xff]  ;;  %v2064_v23 = vld [vmem:[%s2507_s13 + $0x14] sm:$0xf0]  ;;  %473 = vst.msk [vmem:[#allocation2 + $0x20] sm:$0xff] %vm468_vm0, %v2336_v46 }
  0x1b   : > { %775 = vmatpush.bf16.msra.mxu1 %v2091_v3  ;;  %v1857_v16 = vld [vmem:[%s2507_s13] sm:$0xf]  ;;  %v2062_v17 = vld [vmem:[%s2507_s13 + $0x4] sm:$0xf0]  ;;  %v2061_v18 = vld [vmem:[%s2507_s13 + $0x4] sm:$0xf]  ;;  %v1866_v26 = vor.u32 %v2064_v23, %v1865_v22 }
  0x1c   : > { %v1859_v19 = vld [vmem:[%s2507_s13 + $0x8] sm:$0xf0]  ;;  %v1858_v20 = vor.u32 %v2062_v17, %v1857_v16  ;;  %v2063_v24 = vld [vmem:[%s2507_s13 + $0x14] sm:$0xf]  ;;  %v1867_v25 = vld [vmem:[%s2507_s13 + $0x18] sm:$0xf0] }
  0x1d   : > { %v1862_v21 = vor.u32 %v2061_v18, %v1859_v19  ;;  %v1870_v27 = vor.u32 %v2063_v24, %v1867_v25  ;;  %v1873_v28 = vld [vmem:[%s2507_s13 + $0x20] sm:$0xf]  ;;  %v2066_v29 = vld [vmem:[%s2507_s13 + $0x24] sm:$0xf0]  ;;  %v2065_v30 = vld [vmem:[%s2507_s13 + $0x24] sm:$0xf] }
  0x1e   : > { %727 = vmatpush.bf16.msra.mxu0 %v2082_v4  ;;  %v1875_v31 = vld [vmem:[%s2507_s13 + $0x28] sm:$0xf0]  ;;  %v1874_v32 = vor.u32 %v2066_v29, %v1873_v28  ;;  %v1881_v34 = vld [vmem:[%s2507_s13 + $0x30] sm:$0xf]  ;;  %v2068_v35 = vld [vmem:[%s2507_s13 + $0x34] sm:$0xf0] }
  0x1f   : > { %776 = vmatpush.bf16.msra.mxu1 %v2090_v5  ;;  %v1878_v33 = vor.u32 %v2065_v30, %v1875_v31  ;;  %v2067_v36 = vld [vmem:[%s2507_s13 + $0x34] sm:$0xf]  ;;  %v1883_v37 = vld [vmem:[%s2507_s13 + $0x38] sm:$0xf0]  ;;  %v1882_v38 = vor.u32 %v2068_v35, %v1881_v34  ;;  %v1889_v40 = vld [vmem:[%s2507_s13 + $0x40] sm:$0xf] }
  0x20   : > { %v1886_v39 = vor.u32 %v2067_v36, %v1883_v37  ;;  %v2070_v41 = vld [vmem:[%s2507_s13 + $0x44] sm:$0xf0]  ;;  %v2069_v42 = vld [vmem:[%s2507_s13 + $0x44] sm:$0xf]  ;;  %v1891_v43 = vld [vmem:[%s2507_s13 + $0x48] sm:$0xf0] }
  0x21   : > { %v1890_v44 = vor.u32 %v2070_v41, %v1889_v40  ;;  %v1894_v45 = vor.u32 %v2069_v42, %v1891_v43  ;;  %474 = vst.msk [vmem:[#allocation2 + $0x28] sm:$0xff] %vm468_vm0, %v2336_v46  ;;  %v1897_v47 = vld [vmem:[%s2507_s13 + $0x50] sm:$0xf]  ;;  %v2072_v48 = vld [vmem:[%s2507_s13 + $0x54] sm:$0xf0]  ;;  %v485_v60 = vld [vmem:[#allocation2] sm:$0xff] }
  0x22   : > { %728 = vmatpush.bf16.msra.mxu0 %v2081_v6  ;;  %475 = vst.msk [vmem:[#allocation2 + $0x30] sm:$0xff] %vm468_vm0, %v2336_v46  ;;  %v1898_v49 = vor.u32 %v2072_v48, %v1897_v47  ;;  %v2071_v50 = vld [vmem:[%s2507_s13 + $0x54] sm:$0xf]  ;;  %v1899_v51 = vld [vmem:[%s2507_s13 + $0x58] sm:$0xf0]  ;;  %v489_v30 = vld [vmem:[#allocation2 + $0x20] sm:$0xff] }
  0x23   : > { %777 = vmatpush.bf16.msra.mxu1 %v2089_v7  ;;  %476 = vst.msk [vmem:[#allocation2 + $0x38] sm:$0xff] %vm468_vm0, %v2336_v46  ;;  %v1902_v52 = vor.u32 %v2071_v50, %v1899_v51  ;;  %v1905_v53 = vld [vmem:[%s2507_s13 + $0x60] sm:$0xf]  ;;  %v2074_v54 = vld [vmem:[%s2507_s13 + $0x64] sm:$0xf0]  ;;  %v488_v22 = vld [vmem:[#allocation2 + $0x18] sm:$0xff] }
  0x24   : > { %477 = vst.msk [vmem:[#allocation2 + $0x40] sm:$0xff] %vm468_vm0, %v2336_v46  ;;  %v2073_v55 = vld [vmem:[%s2507_s13 + $0x64] sm:$0xf]  ;;  %v1906_v56 = vor.u32 %v2074_v54, %v1905_v53  ;;  %v1907_v57 = vld [vmem:[%s2507_s13 + $0x68] sm:$0xf0] }
  0x25   : > { %478 = vst.msk [vmem:[#allocation2 + $0x48] sm:$0xff] %vm468_vm0, %v2336_v46  ;;  %v1910_v58 = vor.u32 %v2073_v55, %v1907_v57  ;;  %v1913_v0 = vld [vmem:[%s2507_s13 + $0x70] sm:$0xf]  ;;  %v2076_v1 = vld [vmem:[%s2507_s13 + $0x74] sm:$0xf0]  ;;  %v486_v7 = vld [vmem:[#allocation2 + $0x8] sm:$0xff] }
  0x26   : > { %729 = vmatpush.bf16.msra.mxu0 %v2080_v8  ;;  %479 = vst.msk [vmem:[#allocation2 + $0x50] sm:$0xff] %vm468_vm0, %v2336_v46  ;;  %v1914_v2 = vor.u32 %v2076_v1, %v1913_v0  ;;  %v2075_v3 = vld [vmem:[%s2507_s13 + $0x74] sm:$0xf]  ;;  %v1915_v4 = vld [vmem:[%s2507_s13 + $0x78] sm:$0xf0] }
  0x27   : > { %778 = vmatpush.bf16.msra.mxu1 %v2088_v9  ;;  %480 = vst.msk [vmem:[#allocation2 + $0x58] sm:$0xff] %vm468_vm0, %v2336_v46  ;;  %v1918_v5 = vor.u32 %v2075_v3, %v1915_v4 }
  0x28   : > { %481 = vst.msk [vmem:[#allocation2 + $0x60] sm:$0xff] %vm468_vm0, %v2336_v46 }
  0x29   : > { %482 = vst.msk [vmem:[#allocation2 + $0x68] sm:$0xff] %vm468_vm0, %v2336_v46 }
  0x2a   : > { %730 = vmatpush.bf16.msra.mxu0 %v2079_v10  ;;  %483 = vst.msk [vmem:[#allocation2 + $0x70] sm:$0xff] %vm468_vm0, %v2336_v46  ;;  %v492_v54 = vld [vmem:[#allocation2 + $0x38] sm:$0xff] }
  0x2b   : > { %779 = vmatpush.bf16.msra.mxu1 %v2087_v11  ;;  %484 = vst.msk [vmem:[#allocation2 + $0x78] sm:$0xff] %vm468_vm0, %v2336_v46  ;;  %v491_v46 = vld [vmem:[#allocation2 + $0x30] sm:$0xff] }
  0x2c   : > { %v494_v4 = vld [vmem:[#allocation2 + $0x48] sm:$0xff] }
  0x2e   : > { %731 = vmatpush.bf16.msra.mxu0 %v2078_v12 }
  0x2f   : > { %780 = vmatpush.bf16.msra.mxu1 %v2086_v13 }
  0x32   : > { %732 = vmatpush.bf16.msra.mxu0 %v2077_v14  ;;  %v487_v14 = vld [vmem:[#allocation2 + $0x10] sm:$0xff] }
  0x33   : > { %781 = vmatpush.bf16.msra.mxu1 %v2085_v15 }
  0x35   : > { %733 = vmatmul.bf16.vlgmr.msra.gmra.mxu0 %v1858_v20 }
  0x36   : > { %782 = vmatmul.bf16.vlgmr.msra.gmra.mxu1 %v1862_v21 }
  0x45   : > { %738 = vmatmul.bf16.gmra.mxu0 %v1866_v26 }
  0x46   : > { %787 = vmatmul.bf16.gmra.mxu1 %v1870_v27 }
  0x55   : > { %743 = vmatmul.bf16.gmra.mxu0 %v1874_v32 }
  0x56   : > { %792 = vmatmul.bf16.gmra.mxu1 %v1878_v33 }
  0x65   : > { %748 = vmatmul.bf16.gmra.mxu0 %v1882_v38  ;;  %v490_v38 = vld [vmem:[#allocation2 + $0x28] sm:$0xff] }
  0x66   : > { %797 = vmatmul.bf16.gmra.mxu1 %v1886_v39 }
  0x75   : > { %753 = vmatmul.bf16.gmra.mxu0 %v1890_v44 }
  0x76   : > { %802 = vmatmul.bf16.gmra.mxu1 %v1894_v45 }
  0x85   : > { %758 = vmatmul.bf16.gmra.mxu0 %v1898_v49 }
  0x86   : > { %807 = vmatmul.bf16.gmra.mxu1 %v1902_v52 }
  0x95   : > { %763 = vmatmul.bf16.gmra.mxu0 %v1906_v56 }
  0x96   : > { %812 = vmatmul.bf16.gmra.mxu1 %v1910_v58 }
  0xa5   : > { %768 = vmatmul.bf16.gmra.mxu0 %v1914_v2 }
  0xa6   : > { %817 = vmatmul.bf16.gmra.mxu1 %v1918_v5 }
  0xb2   : > { %v734_v59 = vpop.f32.mrf.mxu0 }
  0xb3   : > { %v783_v61 = vpop.f32.mrf.mxu1 }
  0xb4   : > { %v784_v62 = vadd.f32 %v783_v61, %v734_v59 }
  0xb6   : > { %v823_v63 = vadd.f32 %v784_v62, %v485_v60  ;;  %v493_v62 = vld [vmem:[#allocation2 + $0x40] sm:$0xff] }
  0xb8   : > { %840 = vst.msk [vmem:[#allocation2] sm:$0xff] %vm468_vm0, %v823_v63 }
  0xba   : > { %v736_v6 = vpop.f32.mrf.mxu0 }
  0xbb   : > { %v785_v8 = vpop.f32.mrf.mxu1 }
  0xbc   : > { %v786_v9 = vadd.f32 %v785_v8, %v736_v6 }
  0xbe   : > { %v824_v10 = vadd.f32 %v786_v9, %v486_v7  ;;  %v495_v9 = vld [vmem:[#allocation2 + $0x50] sm:$0xff] }
  0xbf   : > { %v2564_v11 = vld [vmem:[#allocation2] sm:$0xff] }
  0xc0   : > { %841 = vst.msk [vmem:[#allocation2 + $0x8] sm:$0xff] %vm468_vm0, %v824_v10  ;;  %v947_v12 = vmax.f32 %v2564_v11, 1e-20  ;;  %vm979_vm1 = vcmp.gt.f32.partialorder %v2564_v11, 0.0 }
  0xc2   : > { %2224 = vrcp.f32 %v947_v12  ;;  %v739_v13 = vpop.f32.mrf.mxu0 }
  0xc3   : > { %v788_v15 = vpop.f32.mrf.mxu1 }
  0xc4   : > { %v789_v16 = vadd.f32 %v788_v15, %v739_v13  ;;  %v496_v15 = vld [vmem:[#allocation2 + $0x58] sm:$0xff] }
  0xc6   : > { %v825_v17 = vadd.f32 %v789_v16, %v487_v14 }
  0xc7   : > { %v2568_v18 = vld [vmem:[#allocation2 + $0x8] sm:$0xff] }
  0xc8   : > { %v2225_v19 = vpop.eup %2224  ;;  %842 = vst.msk [vmem:[#allocation2 + $0x10] sm:$0xff] %vm468_vm0, %v825_v17  ;;  %v948_v20 = vmax.f32 %v2568_v18, 1e-20  ;;  %vm980_vm2 = vcmp.gt.f32.partialorder %v2568_v18, 0.0 }
  0xc9   : > { %1011 = vrot.lane.b32.xlu0 %v2225_v19, %s2337_s21 }
  0xca   : > { %2226 = vrcp.f32 %v948_v20  ;;  %v741_v21 = vpop.f32.mrf.mxu0 }
  0xcb   : > { %v790_v23 = vpop.f32.mrf.mxu1 }
  0xcc   : > { %v791_v24 = vadd.f32 %v790_v23, %v741_v21  ;;  %v497_v21 = vld [vmem:[#allocation2 + $0x60] sm:$0xff] }
  0xce   : > { %v826_v25 = vadd.f32 %v791_v24, %v488_v22 }
  0xcf   : > { %v2573_v26 = vld [vmem:[#allocation2 + $0x10] sm:$0xff] }
  0xd0   : > { %v2227_v27 = vpop.eup %2226  ;;  %843 = vst.msk [vmem:[#allocation2 + $0x18] sm:$0xff] %vm468_vm0, %v826_v25  ;;  %v949_v28 = vmax.f32 %v2573_v26, 1e-20  ;;  %vm981_vm5 = vcmp.gt.f32.partialorder %v2573_v26, 0.0 }
  0xd1   : > { %1013 = vrot.lane.b32.xlu0 %v2227_v27, %s2337_s21  ;;  %v498_v27 = vld [vmem:[#allocation2 + $0x68] sm:$0xff] }
  0xd2   : > { %2228 = vrcp.f32 %v949_v28  ;;  %v744_v29 = vpop.f32.mrf.mxu0 }
  0xd3   : > { %v793_v31 = vpop.f32.mrf.mxu1 }
  0xd4   : > { %v794_v32 = vadd.f32 %v793_v31, %v744_v29 }
  0xd6   : > { %v827_v33 = vadd.f32 %v794_v32, %v489_v30 }
  0xd7   : > { %v2578_v34 = vld [vmem:[#allocation2 + $0x18] sm:$0xff] }
  0xd8   : > { %v2229_v35 = vpop.eup %2228  ;;  %844 = vst.msk [vmem:[#allocation2 + $0x20] sm:$0xff] %vm468_vm0, %v827_v33  ;;  %v950_v36 = vmax.f32 %v2578_v34, 1e-20  ;;  %v499_v33 = vld [vmem:[#allocation2 + $0x70] sm:$0xff]  ;;  %vm982_vm4 = vcmp.gt.f32.partialorder %v2578_v34, 0.0 }
  0xd9   : > { %1015 = vrot.lane.b32.xlu1 %v2229_v35, %s2337_s21 }
  0xda   : > { %2230 = vrcp.f32 %v950_v36  ;;  %v746_v37 = vpop.f32.mrf.mxu0 }
  0xdb   : > { %v795_v39 = vpop.f32.mrf.mxu1 }
  0xdc   : > { %v796_v40 = vadd.f32 %v795_v39, %v746_v37 }
  0xde   : > { %v828_v41 = vadd.f32 %v796_v40, %v490_v38 }
  0xdf   : > { %v2583_v42 = vld [vmem:[#allocation2 + $0x20] sm:$0xff] }
  0xe0   : > { %v2231_v43 = vpop.eup %2230  ;;  %845 = vst.msk [vmem:[#allocation2 + $0x28] sm:$0xff] %vm468_vm0, %v828_v41  ;;  %v951_v44 = vmax.f32 %v2583_v42, 1e-20  ;;  %vm983_vm6 = vcmp.gt.f32.partialorder %v2583_v42, 0.0 }
  0xe1   : > { %1017 = vrot.lane.b32.xlu1 %v2231_v43, %s2337_s21 }
  0xe2   : > { %2232 = vrcp.f32 %v951_v44  ;;  %v749_v45 = vpop.f32.mrf.mxu0 }
  0xe3   : > { %v798_v47 = vpop.f32.mrf.mxu1 }
  0xe4   : > { %v799_v48 = vadd.f32 %v798_v47, %v749_v45 }
  0xe6   : > { %v829_v49 = vadd.f32 %v799_v48, %v491_v46 }
  0xe7   : > { %v2588_v50 = vld [vmem:[#allocation2 + $0x28] sm:$0xff] }
  0xe8   : > { %v2233_v51 = vpop.eup %2232  ;;  %846 = vst.msk [vmem:[#allocation2 + $0x30] sm:$0xff] %vm468_vm0, %v829_v49  ;;  %v952_v52 = vmax.f32 %v2588_v50, 1e-20  ;;  %vm984_vm7 = vcmp.gt.f32.partialorder %v2588_v50, 0.0 }
  0xe9   : > { %1019 = vrot.lane.b32.xlu2 %v2233_v51, %s2337_s21 }
  0xea   : > { %2234 = vrcp.f32 %v952_v52  ;;  %v751_v53 = vpop.f32.mrf.mxu0 }
  0xeb   : > { %v800_v55 = vpop.f32.mrf.mxu1 }
  0xec   : > { %v801_v56 = vadd.f32 %v800_v55, %v751_v53  ;;  %v500_v55 = vld [vmem:[#allocation2 + $0x78] sm:$0xff] }
  0xee   : > { %v830_v57 = vadd.f32 %v801_v56, %v492_v54 }
  0xef   : > { %v2593_v58 = vld [vmem:[#allocation2 + $0x30] sm:$0xff] }
  0xf0   : > { %v2235_v59 = vpop.eup %2234  ;;  %v953_v60 = vmax.f32 %v2593_v58, 1e-20  ;;  %847 = vst.msk [vmem:[#allocation2 + $0x38] sm:$0xff] %vm468_vm0, %v830_v57  ;;  %vm985_vm8 = vcmp.gt.f32.partialorder %v2593_v58, 0.0 }
  0xf1   : > { %1021 = vrot.lane.b32.xlu2 %v2235_v59, %s2337_s21 }
  0xf2   : > { %2236 = vrcp.f32 %v953_v60  ;;  %v754_v61 = vpop.f32.mrf.mxu0 }
  0xf3   : > { %v803_v63 = vpop.f32.mrf.mxu1 }
  0xf4   : > { %v804_v0 = vadd.f32 %v803_v63, %v754_v61 }
  0xf6   : > { %v831_v1 = vadd.f32 %v804_v0, %v493_v62 }
  0xf7   : > { %v2605_v31 = vld [vmem:[#allocation2 + $0x38] sm:$0xff] }
  0xf8   : > { %v2237_v2 = vpop.eup %2236  ;;  %848 = vst.msk [vmem:[#allocation2 + $0x40] sm:$0xff] %vm468_vm0, %v831_v1  ;;  %v954_v38 = vmax.f32 %v2605_v31, 1e-20  ;;  %vm986_vm9 = vcmp.gt.f32.partialorder %v2605_v31, 0.0 }
  0xf9   : > { %1023 = vrot.lane.b32.xlu2 %v2237_v2, %s2337_s21 }
  0xfa   : > { %v756_v3 = vpop.f32.mrf.mxu0  ;;  %2238 = vrcp.f32 %v954_v38 }
  0xfb   : > { %v805_v5 = vpop.f32.mrf.mxu1 }
  0xfc   : > { %v806_v6 = vadd.f32 %v805_v5, %v756_v3 }
  0xfe   : > { %v832_v7 = vadd.f32 %v806_v6, %v494_v4 }
  0xff   : > { %v2610_v41 = vld [vmem:[#allocation2 + $0x40] sm:$0xff] }
 0x100   : > { %849 = vst.msk [vmem:[#allocation2 + $0x48] sm:$0xff] %vm468_vm0, %v832_v7  ;;  %v955_v43 = vmax.f32 %v2610_v41, 1e-20  ;;  %v2239_v46 = vpop.eup %2238  ;;  %vm987_vm12 = vcmp.gt.f32.partialorder %v2610_v41, 0.0 }
 0x102   : > { %v759_v8 = vpop.f32.mrf.mxu0  ;;  %2240 = vrcp.f32 %v955_v43 }
 0x103   : > { %v808_v10 = vpop.f32.mrf.mxu1 }
 0x104   : > { %v809_v12 = vadd.f32 %v808_v10, %v759_v8 }
 0x106   : > { %v833_v13 = vadd.f32 %v809_v12, %v495_v9 }
 0x107   : > { %v2617_v48 = vld [vmem:[#allocation2 + $0x48] sm:$0xff] }
 0x108   : > { %850 = vst.msk [vmem:[#allocation2 + $0x50] sm:$0xff] %vm468_vm0, %v833_v13  ;;  %v2241_v49 = vpop.eup %2240  ;;  %v956_v53 = vmax.f32 %v2617_v48, 1e-20  ;;  %vm988_vm13 = vcmp.gt.f32.partialorder %v2617_v48, 0.0 }
 0x10a   : > { %v761_v14 = vpop.f32.mrf.mxu0  ;;  %2242 = vrcp.f32 %v956_v53 }
 0x10b   : > { %v810_v16 = vpop.f32.mrf.mxu1 }
 0x10c   : > { %v811_v17 = vadd.f32 %v810_v16, %v761_v14 }
 0x10e   : > { %v834_v19 = vadd.f32 %v811_v17, %v496_v15 }
 0x10f   : > { %v2623_v59 = vld [vmem:[#allocation2 + $0x50] sm:$0xff] }
 0x110   : > { %851 = vst.msk [vmem:[#allocation2 + $0x58] sm:$0xff] %vm468_vm0, %v834_v19  ;;  %v957_v62 = vmax.f32 %v2623_v59, 1e-20  ;;  %v2243_v3 = vpop.eup %2242  ;;  %vm989_vm10 = vcmp.gt.f32.partialorder %v2623_v59, 0.0 }
 0x112   : > { %v764_v20 = vpop.f32.mrf.mxu0  ;;  %2244 = vrcp.f32 %v957_v62 }
 0x113   : > { %v813_v22 = vpop.f32.mrf.mxu1 }
 0x114   : > { %v814_v23 = vadd.f32 %v813_v22, %v764_v20  ;;  %v2093_v22 = vld [vmem:[%s2996_s5] sm:$0xff] }
 0x116   : > { %v835_v24 = vadd.f32 %v814_v23, %v497_v21  ;;  %v2094_v21 = vld [vmem:[%s2996_s5 + $0x8] sm:$0xff]  ;;  %v2669_v23 = vld [vmem:[%s2994_s3] ss:$0 sm:$0xff] }
 0x117   : > { %v2629_v2 = vld [vmem:[#allocation2 + $0x58] sm:$0xff]  ;;  %1230 = vmatpush.bf16.msrb.mxu0 %v2094_v21  ;;  %2153 = vmatpush.bf16.msrb.mxu1 %v2094_v21 }
 0x118   : > { %852 = vst.msk [vmem:[#allocation2 + $0x60] sm:$0xff] %vm468_vm0, %v835_v24  ;;  %v958_v5 = vmax.f32 %v2629_v2, 1e-20  ;;  %v2245_v8 = vpop.eup %2244  ;;  %2154 = vmatpush.bf16.msra.mxu2 %v2094_v21  ;;  %2155 = vmatpush.bf16.msra.mxu3 %v2094_v21  ;;  %v2672_v24 = vld [vmem:[%s2664_s23] sm:$0xff]  ;;  %vm990_vm11 = vcmp.gt.f32.partialorder %v2629_v2, 0.0 }
 0x11a   : > { %v766_v25 = vpop.f32.mrf.mxu0  ;;  %2246 = vrcp.f32 %v958_v5 }
 0x11b   : > { %v815_v28 = vpop.f32.mrf.mxu1  ;;  %1231 = vmatpush.bf16.msrb.mxu0 %v2093_v22  ;;  %2156 = vmatpush.bf16.msrb.mxu1 %v2093_v22 }
 0x11c   : > { %v816_v29 = vadd.f32 %v815_v28, %v766_v25  ;;  %2157 = vmatpush.bf16.msra.mxu2 %v2093_v22  ;;  %2158 = vmatpush.bf16.msra.mxu3 %v2093_v22  ;;  %v2675_v25 = vld [vmem:[%s2664_s23 + $0x8] sm:$0xff]  ;;  %v879_v28 = vmul.f32 %v2669_v23, %v2672_v24 }
 0x11e   : > { %v836_v30 = vadd.f32 %v816_v29, %v498_v27  ;;  %v2680_v27 = vld [vmem:[%s2995_s4] ss:$0 sm:$0xff]  ;;  %v880_v29 = vmul.f32 %v2669_v23, %v2675_v25 }
 0x11f   : > { %v2640_v12 = vld [vmem:[#allocation2 + $0x60] sm:$0xff] }
 0x120   : > { %853 = vst.msk [vmem:[#allocation2 + $0x68] sm:$0xff] %vm468_vm0, %v836_v30  ;;  %v959_v14 = vmax.f32 %v2640_v12, 1e-20  ;;  %v2247_v16 = vpop.eup %2246  ;;  %vm991_vm15 = vcmp.gt.f32.partialorder %v2640_v12, 0.0 }
 0x122   : > { %v769_v32 = vpop.f32.mrf.mxu0 }
 0x123   : > { %v818_v35 = vpop.f32.mrf.mxu1 }
 0x124   : > { %v819_v36 = vadd.f32 %v818_v35, %v769_v32  ;;  %v899_v35 = vadd.f32 %v2680_v27, %v879_v28 }
 0x126   : > { %v837_v40 = vadd.f32 %v819_v36, %v499_v33  ;;  %v2687_v33 = vld [vmem:[%s2664_s23 + $0x18] sm:$0xff]  ;;  %v900_v36 = vadd.f32 %v2680_v27, %v880_v29 }
 0x127   : > { %v2633_v4 = vld [vmem:[#allocation2 + $0x68] sm:$0xff]  ;;  %v882_v38 = vmul.f32 %v2669_v23, %v2687_v33 }
 0x128   : > { %854 = vst.msk [vmem:[#allocation2 + $0x70] sm:$0xff] %vm468_vm0, %v837_v40  ;;  %v960_v7 = vmax.f32 %v2633_v4, 1e-20  ;;  %v916_v40 = vmax.f32 %v900_v36, 0.0  ;;  %vm992_vm14 = vcmp.gt.f32.partialorder %v2633_v4, 0.0 }
 0x12a   : > { %v771_v54 = vpop.f32.mrf.mxu0  ;;  %2248 = vrcp.f32 %v960_v7 }
 0x12b   : > { %v820_v56 = vpop.f32.mrf.mxu1  ;;  %2250 = vrcp.f32 %v959_v14 }
 0x12c   : > { %v821_v60 = vadd.f32 %v820_v56, %v771_v54 }
 0x12e   : > { %v838_v61 = vadd.f32 %v821_v60, %v500_v55  ;;  %v2704_v55 = vld [vmem:[%s2664_s23 + $0x20] sm:$0xff] }
 0x12f   : > { %v2644_v13 = vld [vmem:[#allocation2 + $0x70] sm:$0xff] }
 0x130   : > { %855 = vst.msk [vmem:[#allocation2 + $0x78] sm:$0xff] %vm468_vm0, %v838_v61  ;;  %v961_v15 = vmax.f32 %v2644_v13, 1e-20  ;;  %v2249_v17 = vpop.eup %2248 }
 0x131   : > { %v2251_v19 = vpop.eup %2250 }
 0x132   : > { %2252 = vrcp.f32 %v961_v15 }
 0x137   : > { %v2712_v61 = vld [vmem:[#allocation2 + $0x78] sm:$0xff] }
 0x138   : > { %v2253_v20 = vpop.eup %2252  ;;  %v962_v7 = vmax.f32 %v2712_v61, 1e-20 }
 0x13a   : > { %2254 = vrcp.f32 %v962_v7 }
 0x13b   : > { %v1012_v37 = vpop.permute.xlu0 %1011 }
 0x13c   : > { %v1059_v39 = vmul.f32 %v1012_v37, %v2564_v11  ;;  %v2692_v37 = vld [vmem:[%s2664_s23 + $0x10] sm:$0xff] }
 0x13d   : > { %v881_v43 = vmul.f32 %v2669_v23, %v2692_v37 }
 0x13e   : > { %1091 = vrot.lane.b32.xlu0 %v1059_v39, %s2338_s30  ;;  %v915_v39 = vmax.f32 %v899_v35, 0.0 }
 0x13f   : > { %v901_v54 = vadd.f32 %v2680_v27, %v881_v43 }
 0x140   : > { %v2255_v29 = vpop.eup %2254 }
 0x141   : > { %v917_v60 = vmax.f32 %v901_v54, 0.0 }
 0x143   : > { %v1014_v44 = vpop.permute.xlu0 %1013  ;;  %v1020_v47 = vpop.permute.xlu2 %1019 }
 0x144   : > { %v1060_v45 = vmul.f32 %v1014_v44, %v2568_v18  ;;  %v1063_v9 = vmul.f32 %v1020_v47, %v2583_v42  ;;  %v902_v47 = vadd.f32 %v2680_v27, %v882_v38 }
 0x146   : > { %1025 = vrot.lane.b32.xlu0 %v2239_v46, %s2337_s21  ;;  %1093 = vrot.lane.b32.xlu1 %v1060_v45, %s2338_s30  ;;  %v918_v18 = vmax.f32 %v902_v47, 0.0  ;;  %v2745_v47 = vld [vmem:[%s2664_s23 + $0x38] sm:$0xff] }
 0x14b   : > { %v1016_v51 = vpop.permute.xlu1 %1015  ;;  %v1022_v57 = vpop.permute.xlu2 %1021 }
 0x14c   : > { %v1061_v52 = vmul.f32 %v1016_v51, %v2573_v26  ;;  %v1064_v0 = vmul.f32 %v1022_v57, %v2588_v50  ;;  %v2708_v57 = vld [vmem:[%s2664_s23 + $0x28] sm:$0xff] }
 0x14e   : > { %1027 = vrot.lane.b32.xlu0 %v2241_v49, %s2337_s21  ;;  %1095 = vrot.lane.b32.xlu1 %v1061_v52, %s2338_s30 }
 0x153   : > { %v1018_v63 = vpop.permute.xlu1 %1017  ;;  %v1024_v6 = vpop.permute.xlu2 %1023 }
 0x154   : > { %v1062_v1 = vmul.f32 %v1018_v63, %v2578_v34  ;;  %v1065_v10 = vmul.f32 %v1024_v6, %v2593_v58  ;;  %v883_v63 = vmul.f32 %v2669_v23, %v2704_v55 }
 0x156   : > { %1097 = vrot.lane.b32.xlu2 %v1062_v1, %s2338_s30  ;;  %1101 = vrot.lane.b32.xlu0 %v1064_v0, %s2338_s30  ;;  %v884_v0 = vmul.f32 %v2669_v23, %v2708_v57  ;;  %v903_v14 = vadd.f32 %v2680_v27, %v883_v63 }
 0x157   : > { %1029 = vrot.lane.b32.xlu1 %v2243_v3, %s2337_s21 }
 0x158   : > { %v904_v15 = vadd.f32 %v2680_v27, %v884_v0  ;;  %v919_v26 = vmax.f32 %v903_v14, 0.0 }
 0x15e   : > { %1099 = vrot.lane.b32.xlu2 %v1063_v9, %s2338_s30  ;;  %1103 = vrot.lane.b32.xlu0 %v1065_v10, %s2338_s30 }
 0x15f   : > { %1031 = vrot.lane.b32.xlu1 %v2245_v8, %s2337_s21 }
 0x166   : > { %1033 = vrot.lane.b32.xlu2 %v2247_v16, %s2337_s21  ;;  %1037 = vrot.lane.b32.xlu0 %v2249_v17, %s2337_s21  ;;  %v920_v17 = vmax.f32 %v904_v15, 0.0 }
 0x16e   : > { %1035 = vrot.lane.b32.xlu2 %v2251_v19, %s2337_s21  ;;  %1039 = vrot.lane.b32.xlu0 %v2253_v20, %s2337_s21 }
 0x1b0   : > { %v1098_v30 = vpop.permute.xlu2 %1097  ;;  %v1092_v32 = vpop.permute.xlu0 %1091 }
 0x1b1   : > { %v1139_v44 = vsel %vm979_vm1, %v1092_v32, 0.0  ;;  %v1142_v62 = vsel %vm982_vm4, %v1098_v30, 0.0  ;;  %vm993_vm1 = vcmp.gt.f32.partialorder %v2644_v13, 0.0 }
 0x1b2   : > { %v1155_v52 = vadd.f32 %v1139_v44, %v915_v39  ;;  %v1158_v8 = vadd.f32 %v1142_v62, %v918_v18 }
 0x1b8   : > { %v1100_v45 = vpop.permute.xlu2 %1099  ;;  %v1094_v46 = vpop.permute.xlu1 %1093 }
 0x1b9   : > { %v1140_v49 = vsel %vm980_vm2, %v1094_v46, 0.0  ;;  %v1026_v51 = vpop.permute.xlu0 %1025  ;;  %v1143_v19 = vsel %vm983_vm6, %v1100_v45, 0.0  ;;  %v2742_v46 = vld [vmem:[%s2664_s23 + $0x30] sm:$0xff]  ;;  %vm994_vm2 = vcmp.gt.f32.partialorder %v2712_v61, 0.0 }
 0x1ba   : > { %v1156_v53 = vadd.f32 %v1140_v49, %v916_v40  ;;  %v1066_v11 = vmul.f32 %v1026_v51, %v2605_v31  ;;  %v1159_v30 = vadd.f32 %v1143_v19, %v919_v26  ;;  %v885_v49 = vmul.f32 %v2669_v23, %v2742_v46 }
 0x1bb   : > { %v886_v51 = vmul.f32 %v2669_v23, %v2745_v47 }
 0x1bc   : > { %v1171_v56 = vpack.c.bf16 %v1156_v53, %v1155_v52  ;;  %1105 = vrot.lane.b32.xlu1 %v1066_v11, %s2338_s30  ;;  %v905_v53 = vadd.f32 %v2680_v27, %v885_v49  ;;  %v2753_v11 = vld [vmem:[%s2664_s23 + $0x50] sm:$0xff] }
 0x1bd   : > { %v906_v54 = vadd.f32 %v2680_v27, %v886_v51  ;;  %v889_v18 = vmul.f32 %v2669_v23, %v2753_v11 }
 0x1be   : > { %1991 = vmatmul.msk.bf16.vlgmr.msrb.gmra.mxu0 %vm1199_vm3, %v1171_v56  ;;  %v2757_v56 = vld [vmem:[%s2664_s23 + $0x58] sm:$0xff]  ;;  %v921_v62 = vmax.f32 %v905_v53, 0.0 }
 0x1bf   : > { %v922_v63 = vmax.f32 %v906_v54, 0.0 }
 0x1c0   : > { %v1034_v1 = vpop.permute.xlu2 %1033  ;;  %v1096_v3 = vpop.permute.xlu1 %1095 }
 0x1c1   : > { %v1070_v5 = vmul.f32 %v1034_v1, %v2629_v2  ;;  %v1141_v34 = vsel %vm981_vm5, %v1096_v3, 0.0  ;;  %v1028_v6 = vpop.permute.xlu0 %1027  ;;  %v909_v3 = vadd.f32 %v2680_v27, %v889_v18 }
 0x1c2   : > { %v1157_v9 = vadd.f32 %v1141_v34, %v917_v60  ;;  %v1067_v10 = vmul.f32 %v1028_v6, %v2610_v41  ;;  %v890_v60 = vmul.f32 %v2669_v23, %v2757_v56  ;;  %v2767_v34 = vld [vmem:[%s2664_s23 + $0x40] sm:$0xff]  ;;  %v2098_v41 = vld [vmem:[%s2998_s7 + $0x18] sm:$0xff] }
 0x1c3   : > { %1113 = vrot.lane.b32.xlu0 %v1070_v5, %s2338_s30  ;;  %v887_v58 = vmul.f32 %v2669_v23, %v2767_v34  ;;  %v925_v31 = vmax.f32 %v909_v3, 0.0  ;;  %1361 = vmatpush.bf16.msrb.mxu3 %v2098_v41  ;;  %v2816_v3 = vld [vmem:[%s2664_s23 + $0x70] sm:$0xff] }
 0x1c4   : > { %v1172_v16 = vpack.c.bf16 %v1158_v8, %v1157_v9  ;;  %1107 = vrot.lane.b32.xlu1 %v1067_v10, %s2338_s30  ;;  %v910_v6 = vadd.f32 %v2680_v27, %v890_v60  ;;  %v2771_v9 = vld [vmem:[%s2664_s23 + $0x48] sm:$0xff] }
 0x1c6   : > { %1992 = vmatmul.msk.bf16.vlgmr.msrb.gmra.mxu1 %vm1199_vm3, %v1172_v16  ;;  %v926_v15 = vmax.f32 %v910_v6, 0.0  ;;  %v888_v16 = vmul.f32 %v2669_v23, %v2771_v9  ;;  %v893_v6 = vmul.f32 %v2669_v23, %v2816_v3 }
 0x1c8   : > { %v1036_v42 = vpop.permute.xlu2 %1035 }
 0x1c9   : > { %v1030_v20 = vpop.permute.xlu1 %1029  ;;  %v1102_v21 = vpop.permute.xlu0 %1101  ;;  %v1071_v50 = vmul.f32 %v1036_v42, %v2640_v12  ;;  %v2095_v12 = vld [vmem:[%s2998_s7] sm:$0xff] }
 0x1ca   : > { %v1068_v22 = vmul.f32 %v1030_v20, %v2617_v48  ;;  %v1144_v28 = vsel %vm984_vm7, %v1102_v21, 0.0  ;;  %v907_v20 = vadd.f32 %v2680_v27, %v887_v58 }
 0x1cb   : > { %v1160_v32 = vadd.f32 %v1144_v28, %v920_v17 }
 0x1cc   : > { %1109 = vrot.lane.b32.xlu2 %v1068_v22, %s2338_s30  ;;  %1041 = vrot.lane.b32.xlu1 %v2255_v29, %s2337_s21  ;;  %v2783_v29 = vld [vmem:[%s2664_s23 + $0x68] sm:$0xff] }
 0x1cd   : > { %v1173_v35 = vpack.c.bf16 %v1160_v32, %v1159_v30  ;;  %v2786_v32 = vld [vmem:[%s2664_s23 + $0x60] sm:$0xff] }
 0x1cf   : > { %1993 = vmatmul.msk.bf16.vlgmr.msra.gmra.mxu2 %vm1199_vm3, %v1173_v35  ;;  %v923_v35 = vmax.f32 %v907_v20, 0.0 }
 0x1d1   : > { %v1032_v36 = vpop.permute.xlu1 %1031  ;;  %v1104_v38 = vpop.permute.xlu0 %1103 }
 0x1d2   : > { %v1069_v39 = vmul.f32 %v1032_v36, %v2623_v59  ;;  %v1145_v0 = vsel %vm985_vm8, %v1104_v38, 0.0  ;;  %v908_v59 = vadd.f32 %v2680_v27, %v888_v16  ;;  %v892_v36 = vmul.f32 %v2669_v23, %v2783_v29 }
 0x1d3   : > { %v1161_v7 = vadd.f32 %v1145_v0, %v921_v62  ;;  %v891_v38 = vmul.f32 %v2669_v23, %v2786_v32 }
 0x1d4   : > { %1111 = vrot.lane.b32.xlu2 %v1069_v39, %s2338_s30  ;;  %1115 = vrot.lane.b32.xlu1 %v1071_v50, %s2338_s30  ;;  %v924_v2 = vmax.f32 %v908_v59, 0.0 }
 0x1d5   : > { %v911_v48 = vadd.f32 %v2680_v27, %v891_v38 }
 0x1d7   : > { %v927_v53 = vmax.f32 %v911_v48, 0.0 }
 0x1d9   : > { %v1038_v40 = vpop.permute.xlu0 %1037 }
 0x1da   : > { %v1072_v43 = vmul.f32 %v1038_v40, %v2633_v4  ;;  %v2097_v4 = vld [vmem:[%s2998_s7 + $0x10] sm:$0xff] }
 0x1db   : > { %1362 = vmatpush.bf16.msrb.mxu3 %v2097_v4 }
 0x1dc   : > { %1117 = vrot.lane.b32.xlu2 %v1072_v43, %s2338_s30 }
 0x1e1   : > { %v1040_v44 = vpop.permute.xlu0 %1039 }
 0x1e2   : > { %v1073_v45 = vmul.f32 %v1040_v44, %v2644_v13 }
 0x1e4   : > { %1119 = vrot.lane.b32.xlu0 %v1073_v45, %s2338_s30  ;;  %v912_v45 = vadd.f32 %v2680_v27, %v892_v36 }
 0x226   : > { %v1110_v52 = vpop.permute.xlu2 %1109 }
 0x227   : > { %v1148_v50 = vsel %vm988_vm13, %v1110_v52, 0.0  ;;  %v928_v52 = vmax.f32 %v912_v45, 0.0 }
 0x228   : > { %v1164_v44 = vadd.f32 %v1148_v50, %v924_v2 }
 0x22e   : > { %v1106_v1 = vpop.permute.xlu1 %1105  ;;  %v1112_v10 = vpop.permute.xlu2 %1111 }
 0x22f   : > { %v1146_v5 = vsel %vm986_vm9, %v1106_v1, 0.0  ;;  %v1149_v26 = vsel %vm989_vm10, %v1112_v10, 0.0  ;;  %v2096_v1 = vld [vmem:[%s2998_s7 + $0x8] sm:$0xff] }
 0x230   : > { %v1162_v8 = vadd.f32 %v1146_v5, %v922_v63  ;;  %v1165_v22 = vadd.f32 %v1149_v26, %v925_v31  ;;  %1363 = vmatpush.bf16.msrb.mxu3 %v2096_v1  ;;  %v2819_v5 = vld [vmem:[%s2664_s23 + $0x78] sm:$0xff] }
 0x232   : > { %v1174_v14 = vpack.c.bf16 %v1162_v8, %v1161_v7  ;;  %v894_v7 = vmul.f32 %v2669_v23, %v2819_v5  ;;  %v913_v8 = vadd.f32 %v2680_v27, %v893_v6 }
 0x234   : > { %1994 = vmatmul.msk.bf16.gmra.mxu2 %vm1199_vm3, %v1174_v14  ;;  %1364 = vmatpush.bf16.msrb.mxu3 %v2095_v12  ;;  %v914_v10 = vadd.f32 %v2680_v27, %v894_v7  ;;  %v929_v58 = vmax.f32 %v913_v8, 0.0  ;;  %v2221_v27 = vld [vmem:[%s2997_s6] ss:$0 sm:$0xff] }
 0x235   : > { %v1114_v17 = vpop.permute.xlu0 %1113 }
 0x236   : > { %v1108_v19 = vpop.permute.xlu1 %1107  ;;  %v1150_v21 = vsel %vm990_vm11, %v1114_v17, 0.0  ;;  %v1118_v51 = vpop.permute.xlu2 %1117  ;;  %v930_v31 = vmax.f32 %v914_v10, 0.0 }
 0x237   : > { %v1166_v28 = vadd.f32 %v1150_v21, %v926_v15  ;;  %v1147_v42 = vsel %vm987_vm12, %v1108_v19, 0.0  ;;  %v1152_v54 = vsel %vm992_vm14, %v1118_v51, 0.0 }
 0x238   : > { %v1163_v39 = vadd.f32 %v1147_v42, %v923_v35  ;;  %v1168_v62 = vadd.f32 %v1152_v54, %v928_v52 }
 0x239   : > { %v1176_v30 = vpack.c.bf16 %v1166_v28, %v1165_v22 }
 0x23a   : > { %v1175_v49 = vpack.c.bf16 %v1164_v44, %v1163_v39 }
 0x23b   : > { %1996 = vmatmul.msk.bf16.vlgmr.msra.gmra.mxu3 %vm1199_vm3, %v1176_v30  ;;  %v1233_v15 = vpop.f32.mrf.mxu0 }
 0x23c   : > { %v1234_v13 = vadd.f32 %v2221_v27, %v1233_v15 }
 0x23e   : > { %v1042_v40 = vpop.permute.xlu1 %1041  ;;  %v1273_v30 = vmax.f32 %v1234_v13, 0.0 }
 0x23f   : > { %v1074_v43 = vmul.f32 %v1042_v40, %v2712_v61 }
 0x241   : > { %1121 = vrot.lane.b32.xlu1 %v1074_v43, %s2338_s30  ;;  %s2270_s30 = sshra.s32 %s1740_s24, 4  ;;  %s2271_s30 = int_to_ptr.hbm [resolvable:$true] %s2270_s30 }
 0x242   : > { %s2272_s13 = scalar_lea.hbm %s2271_s30, 64  ;;  %p2277_p1 = scmp.lt.s32.totalorder %s2271_s30, %s3002_s11 }
 0x243   : > { %v1235_v23 = vpop.f32.mrf.mxu0  ;;  %v1238_v28 = vpop.f32.mrf.mxu1  ;;  %p2273_p12 = scmp.ne.s32.totalorder %s2271_s30, %s2272_s13  ;;  %p2278_p2 = scmp.lt.s32.totalorder %s2276_s25, %s2272_s13 }
 0x244   : > { %1995 = vmatmul.msk.bf16.gmra.mxu2 %vm1199_vm3, %v1175_v49  ;;  %v1236_v22 = vadd.f32 %v2221_v27, %v1235_v23  ;;  %v1239_v36 = vadd.f32 %v2221_v27, %v1238_v28 }
 0x245   : > { %p2274_p13 = pnand %p2273_p12, %p2441_p4  ;;  %p2279_p3 = por %p2278_p2, %p2277_p1 }
 0x246   : > { %v1116_v18 = vpop.permute.xlu1 %1115  ;;  %v1274_v59 = vmax.f32 %v1236_v22, 0.0  ;;  %v1275_v50 = vmax.f32 %v1239_v36, 0.0 }
 0x247   : > { %v1151_v60 = vsel %vm991_vm15, %v1116_v18, 0.0  ;;  %p2275_p0 = pneg %p2274_p13 }
 0x248   : > { %v1167_v63 = vadd.f32 %v1151_v60, %v927_v53  ;;  %v1289_v35 = vpack.c.bf16 %v1274_v59, %v1273_v30 }
 0x249   : > { %p2280_p5 = pnand %p2279_p3, %p2275_p0 }
 0x24a   : > { %v1177_v0 = vpack.c.bf16 %v1168_v62, %v1167_v63 }
 0x24b   : > { %v1240_v61 = vpop.f32.mrf.mxu1 }
 0x24c   : > { %1997 = vmatmul.msk.bf16.gmra.mxu3 %vm1199_vm3, %v1177_v0  ;;  %v1241_v2 = vadd.f32 %v2221_v27, %v1240_v61 }
 0x24e   : > { %v1276_v38 = vmax.f32 %v1241_v2, 0.0 }
 0x250   : > { %v1290_v40 = vpack.c.bf16 %v1276_v38, %v1275_v50 }
 0x252   : > { %v1243_v42 = vpop.f32.mrf.mxu2 }
 0x253   : > { %v1244_v44 = vadd.f32 %v2221_v27, %v1243_v42  ;;  %v2844_v42 = vld [vmem:[%s2999_s8] ss:$0 sm:$0xff] }
 0x255   : > { %v1277_v48 = vmax.f32 %v1244_v44, 0.0 }
 0x256   : > { %v1120_v14 = vpop.permute.xlu0 %1119 }
 0x257   : > { %v1153_v16 = vsel %vm993_vm1, %v1120_v14, 0.0 }
 0x258   : > { %v1169_v19 = vadd.f32 %v1153_v16, %v929_v58 }
 0x25a   : > { %v1245_v39 = vpop.f32.mrf.mxu2 }
 0x25b   : > { %v1246_v41 = vadd.f32 %v2221_v27, %v1245_v39 }
 0x25d   : > { %v1278_v45 = vmax.f32 %v1246_v41, 0.0 }
 0x25f   : > { %v1291_v49 = vpack.c.bf16 %v1278_v45, %v1277_v48 }
 0x2b3   : > { %v1122_v26 = vpop.permute.xlu1 %1121 }
 0x2b4   : > { %v1154_v17 = vsel %vm994_vm2, %v1122_v26, 0.0 }
 0x2b5   : > { %v1170_v20 = vadd.f32 %v1154_v17, %v930_v31 }
 0x2b7   : > { %v1178_v21 = vpack.c.bf16 %v1170_v20, %v1169_v19  ;;  %v1248_v43 = vpop.f32.mrf.mxu2 }
 0x2b8   : > { %v1249_v53 = vadd.f32 %v2221_v27, %v1248_v43 }
 0x2b9   : > { %1998 = vmatmul.msk.bf16.gmra.mxu3 %vm1199_vm3, %v1178_v21 }
 0x2ba   : > { %v1279_v60 = vmax.f32 %v1249_v53, 0.0 }
 0x2be   : > { %v1258_v0 = vpop.f32.mrf.mxu3 }
 0x2bf   : > { %v1250_v51 = vpop.f32.mrf.mxu2  ;;  %v1259_v14 = vadd.f32 %v2221_v27, %v1258_v0 }
 0x2c0   : > { %v1251_v52 = vadd.f32 %v2221_v27, %v1250_v51 }
 0x2c1   : > { %v1283_v15 = vmax.f32 %v1259_v14, 0.0 }
 0x2c2   : > { %v1280_v18 = vmax.f32 %v1251_v52, 0.0 }
 0x2c4   : > { %v1292_v62 = vpack.c.bf16 %v1280_v18, %v1279_v60 }
 0x2c6   : > { %v1260_v8 = vpop.f32.mrf.mxu3 }
 0x2c7   : > { %v1253_v54 = vpop.f32.mrf.mxu2  ;;  %v1261_v10 = vadd.f32 %v2221_v27, %v1260_v8 }
 0x2c8   : > { %v1254_v1 = vadd.f32 %v2221_v27, %v1253_v54 }
 0x2c9   : > { %2015 = vmatmul.msk.bf16.vlgmr.msrb.gmra.mxu3 %vm468_vm0, %v1289_v35  ;;  %v1284_v31 = vmax.f32 %v1261_v10, 0.0 }
 0x2ca   : > { %v1281_v6 = vmax.f32 %v1254_v1, 0.0 }
 0x2cb   : > { %v1294_v16 = vpack.c.bf16 %v1284_v31, %v1283_v15 }
 0x2cf   : > { %v1255_v63 = vpop.f32.mrf.mxu2  ;;  %v1263_v58 = vpop.f32.mrf.mxu3 }
 0x2d0   : > { %v1256_v4 = vadd.f32 %v2221_v27, %v1255_v63  ;;  %v1264_v19 = vadd.f32 %v2221_v27, %v1263_v58 }
 0x2d2   : > { %v1282_v12 = vmax.f32 %v1256_v4, 0.0  ;;  %v1285_v21 = vmax.f32 %v1264_v19, 0.0 }
 0x2d4   : > { %v1293_v7 = vpack.c.bf16 %v1282_v12, %v1281_v6 }
 0x2d7   : > { %v1265_v26 = vpop.f32.mrf.mxu3 }
 0x2d8   : > { %v1266_v17 = vadd.f32 %v2221_v27, %v1265_v26 }
 0x2d9   : > { %2016 = vmatmul.msk.bf16.gmra.mxu3 %vm468_vm0, %v1290_v40 }
 0x2da   : > { %v1286_v20 = vmax.f32 %v1266_v17, 0.0  ;;  %v2104_v17 = vld [vmem:[%s3000_s9 + $0x28] sm:$0xff] }
 0x2db   : > { %1645 = vmatpush.bf16.msrb.mxu2 %v2104_v17 }
 0x2dc   : > { %v1295_v23 = vpack.c.bf16 %v1286_v20, %v1285_v21 }
 0x2e9   : > { %2017 = vmatmul.msk.bf16.gmra.mxu3 %vm468_vm0, %v1291_v49 }
 0x2f9   : > { %2018 = vmatmul.msk.bf16.gmra.mxu3 %vm468_vm0, %v1292_v62 }
 0x309   : > { %2019 = vmatmul.msk.bf16.gmra.mxu3 %vm468_vm0, %v1293_v7 }
 0x319   : > { %2020 = vmatmul.msk.bf16.gmra.mxu3 %vm468_vm0, %v1294_v16 }
 0x329   : > { %2021 = vmatmul.msk.bf16.gmra.mxu3 %vm468_vm0, %v1295_v23  ;;  %v2103_v23 = vld [vmem:[%s3000_s9 + $0x20] sm:$0xff] }
 0x32a   : > { %1646 = vmatpush.bf16.msrb.mxu2 %v2103_v23 }
 0x33c   : > { %v1268_v22 = vpop.f32.mrf.mxu3 }
 0x33d   : > { %v1269_v13 = vadd.f32 %v2221_v27, %v1268_v22 }
 0x33f   : > { %v1287_v30 = vmax.f32 %v1269_v13, 0.0 }
 0x344   : > { %v1270_v28 = vpop.f32.mrf.mxu3 }
 0x345   : > { %v1271_v59 = vadd.f32 %v2221_v27, %v1270_v28 }
 0x347   : > { %v1288_v35 = vmax.f32 %v1271_v59, 0.0  ;;  %v2102_v59 = vld [vmem:[%s3000_s9 + $0x18] sm:$0xff] }
 0x348   : > { %1647 = vmatpush.bf16.msrb.mxu2 %v2102_v59 }
 0x349   : > { %v1296_v61 = vpack.c.bf16 %v1288_v35, %v1287_v30 }
 0x34b   : > { %2022 = vmatmul.msk.bf16.gmra.mxu3 %vm468_vm0, %v1296_v61  ;;  %vm1626_vm0 = vcmask 785408  }
 0x34c   : > { %v1366_v2 = vpop.f32.mrf.mxu3 }
 0x34d   : > { %v1367_v36 = vadd.f32 %v2844_v42, %v1366_v2 }
 0x34f   : > { %v1406_v38 = vmax.f32 %v1367_v36, 0.0  ;;  %v2101_v36 = vld [vmem:[%s3000_s9 + $0x10] sm:$0xff] }
 0x350   : > { %1648 = vmatpush.bf16.msrb.mxu2 %v2101_v36 }
 0x351   : > { %v1438_v40 = vpack.c.bf16 %v1406_v38, %v1406_v38 }
 0x353   : > { %v1510_v41 = vunpack.c.l.b16 %v1438_v40  ;;  %v2100_v40 = vld [vmem:[%s3000_s9 + $0x8] sm:$0xff] }
 0x354   : > { %v1368_v50 = vpop.f32.mrf.mxu3  ;;  %1649 = vmatpush.bf16.msrb.mxu2 %v2100_v40 }
 0x355   : > { %v1369_v39 = vadd.f32 %v2844_v42, %v1368_v50  ;;  %v1422_v50 = vpack.c.bf16 %v2672_v24, %v2672_v24 }
 0x357   : > { %v1407_v43 = vmax.f32 %v1369_v39, 0.0  ;;  %v1423_v39 = vpack.c.bf16 %v2675_v25, %v2675_v25 }
 0x359   : > { %v1439_v27 = vpack.c.bf16 %v1407_v43, %v1407_v43 }
 0x35b   : > { %v1511_v44 = vunpack.c.l.b16 %v1439_v27 }
 0x35c   : > { %v1371_v45 = vpop.f32.mrf.mxu3 }
 0x35d   : > { %v1526_v48 = vpack.c.b16 %v1511_v44, %v1510_v41  ;;  %v1372_v49 = vadd.f32 %v2844_v42, %v1371_v45  ;;  %v2099_v44 = vld [vmem:[%s3000_s9] sm:$0xff]  ;;  %v1470_v45 = vunpack.c.l.b16 %v1422_v50  ;;  %v1427_v50 = vpack.c.bf16 %v2708_v57, %v2708_v57 }
 0x35e   : > { %1650 = vmatpush.bf16.msrb.mxu2 %v2099_v44 }
 0x35f   : > { %1534 = vrot.lane.b32.xlu2 %v1526_v48, %s2337_s21  ;;  %v1408_v51 = vmax.f32 %v1372_v49, 0.0  ;;  %v1471_v48 = vunpack.c.l.b16 %v1423_v39 }
 0x361   : > { %v1440_v54 = vpack.c.bf16 %v1408_v51, %v1408_v51  ;;  %v1486_v51 = vpack.c.b16 %v1471_v48, %v1470_v45 }
 0x363   : > { %v1512_v62 = vunpack.c.l.b16 %v1440_v54 }
 0x364   : > { %v1373_v52 = vpop.f32.mrf.mxu3 }
 0x365   : > { %v1374_v53 = vadd.f32 %v2844_v42, %v1373_v52 }
 0x367   : > { %v1409_v18 = vmax.f32 %v1374_v53, 0.0 }
 0x369   : > { %v1441_v60 = vpack.c.bf16 %v1409_v18, %v1409_v18 }
 0x36b   : > { %v1513_v63 = vunpack.c.l.b16 %v1441_v60 }
 0x36c   : > { %v1376_v0 = vpop.f32.mrf.mxu3 }
 0x36d   : > { %v1527_v4 = vpack.c.b16 %v1513_v63, %v1512_v62  ;;  %v1377_v1 = vadd.f32 %v2844_v42, %v1376_v0 }
 0x36f   : > { %1536 = vrot.lane.b32.xlu0 %v1527_v4, %s2337_s21  ;;  %v1410_v12 = vmax.f32 %v1377_v1, 0.0 }
 0x371   : > { %v1442_v8 = vpack.c.bf16 %v1410_v12, %v1410_v12 }
 0x373   : > { %v1514_v58 = vunpack.c.l.b16 %v1442_v8 }
 0x374   : > { %v1378_v6 = vpop.f32.mrf.mxu3 }
 0x375   : > { %v1379_v7 = vadd.f32 %v2844_v42, %v1378_v6 }
 0x377   : > { %v1411_v10 = vmax.f32 %v1379_v7, 0.0 }
 0x379   : > { %v1443_v14 = vpack.c.bf16 %v1411_v10, %v1411_v10 }
 0x37b   : > { %v1515_v31 = vunpack.c.l.b16 %v1443_v14 }
 0x37c   : > { %v1381_v15 = vpop.f32.mrf.mxu3 }
 0x37d   : > { %v1528_v16 = vpack.c.b16 %v1515_v31, %v1514_v58  ;;  %v1382_v26 = vadd.f32 %v2844_v42, %v1381_v15 }
 0x37f   : > { %1538 = vrot.lane.b32.xlu1 %v1528_v16, %s2337_s21  ;;  %v1412_v19 = vmax.f32 %v1382_v26, 0.0 }
 0x381   : > { %v1444_v22 = vpack.c.bf16 %v1412_v19, %v1412_v19 }
 0x383   : > { %v1516_v30 = vunpack.c.l.b16 %v1444_v22 }
 0x384   : > { %v1383_v20 = vpop.f32.mrf.mxu3 }
 0x385   : > { %v1384_v21 = vadd.f32 %v2844_v42, %v1383_v20  ;;  %v1425_v20 = vpack.c.bf16 %v2687_v33, %v2687_v33  ;;  %v1429_v33 = vpack.c.bf16 %v2745_v47, %v2745_v47 }
 0x387   : > { %v1413_v13 = vmax.f32 %v1384_v21, 0.0  ;;  %v1424_v21 = vpack.c.bf16 %v2692_v37, %v2692_v37  ;;  %v1477_v37 = vunpack.c.l.b16 %v1429_v33 }
 0x389   : > { %v1445_v28 = vpack.c.bf16 %v1413_v13, %v1413_v13  ;;  %v1472_v59 = vunpack.c.l.b16 %v1424_v21  ;;  %v2223_v21 = vld [vmem:[%s3001_s10] ss:$0 sm:$0xff] }
 0x38b   : > { %v1517_v35 = vunpack.c.l.b16 %v1445_v28 }
 0x38c   : > { %v1386_v61 = vpop.f32.mrf.mxu3 }
 0x38d   : > { %v1529_v2 = vpack.c.b16 %v1517_v35, %v1516_v30  ;;  %v1387_v38 = vadd.f32 %v2844_v42, %v1386_v61  ;;  %v1473_v30 = vunpack.c.l.b16 %v1425_v20  ;;  %v1428_v61 = vpack.c.bf16 %v2742_v46, %v2742_v46 }
 0x38f   : > { %1540 = vrot.lane.b32.xlu2 %v1529_v2, %s2337_s21  ;;  %v1414_v43 = vmax.f32 %v1387_v38, 0.0  ;;  %v1487_v35 = vpack.c.b16 %v1473_v30, %v1472_v59  ;;  %v1476_v2 = vunpack.c.l.b16 %v1428_v61  ;;  %v1426_v38 = vpack.c.bf16 %v2704_v55, %v2704_v55 }
 0x391   : > { %v1446_v49 = vpack.c.bf16 %v1414_v43, %v1414_v43  ;;  %v1489_v36 = vpack.c.b16 %v1477_v37, %v1476_v2  ;;  %v1474_v40 = vunpack.c.l.b16 %v1426_v38  ;;  %v1475_v43 = vunpack.c.l.b16 %v1427_v50 }
 0x393   : > { %v1518_v52 = vunpack.c.l.b16 %v1446_v49 }
 0x394   : > { %v1388_v27 = vpop.f32.mrf.mxu3 }
 0x395   : > { %v1389_v41 = vadd.f32 %v2844_v42, %v1388_v27  ;;  %v1488_v27 = vpack.c.b16 %v1475_v43, %v1474_v40 }
 0x397   : > { %v1415_v24 = vmax.f32 %v1389_v41, 0.0 }
 0x399   : > { %v1447_v25 = vpack.c.bf16 %v1415_v24, %v1415_v24 }
 0x39b   : > { %v1519_v53 = vunpack.c.l.b16 %v1447_v25 }
 0x39c   : > { %v1391_v54 = vpop.f32.mrf.mxu3 }
 0x39d   : > { %v1530_v18 = vpack.c.b16 %v1519_v53, %v1518_v52  ;;  %v1392_v60 = vadd.f32 %v2844_v42, %v1391_v54  ;;  %v1431_v52 = vpack.c.bf16 %v2771_v9, %v2771_v9  ;;  %v1430_v53 = vpack.c.bf16 %v2767_v34, %v2767_v34 }
 0x39e   : > { %v1432_v34 = vpack.c.bf16 %v2753_v11, %v2753_v11 }
 0x39f   : > { %1542 = vrot.lane.b32.xlu0 %v1530_v18, %s2337_s21  ;;  %v1416_v62 = vmax.f32 %v1392_v60, 0.0  ;;  %v1479_v54 = vunpack.c.l.b16 %v1431_v52 }
 0x3a1   : > { %v1448_v4 = vpack.c.bf16 %v1416_v62, %v1416_v62  ;;  %v1435_v62 = vpack.c.bf16 %v2783_v29, %v2783_v29 }
 0x3a3   : > { %v1520_v6 = vunpack.c.l.b16 %v1448_v4 }
 0x3a4   : > { %v1393_v63 = vpop.f32.mrf.mxu3 }
 0x3a5   : > { %v1394_v0 = vadd.f32 %v2844_v42, %v1393_v63  ;;  %v1434_v63 = vpack.c.bf16 %v2786_v32, %v2786_v32 }
 0x3a7   : > { %v1417_v1 = vmax.f32 %v1394_v0, 0.0  ;;  %v1482_v4 = vunpack.c.l.b16 %v1434_v63 }
 0x3a9   : > { %v1449_v12 = vpack.c.bf16 %v1417_v1, %v1417_v1  ;;  %v1483_v1 = vunpack.c.l.b16 %v1435_v62 }
 0x3ab   : > { %v1521_v7 = vunpack.c.l.b16 %v1449_v12  ;;  %v1492_v9 = vpack.c.b16 %v1483_v1, %v1482_v4  ;;  %v1433_v12 = vpack.c.bf16 %v2757_v56, %v2757_v56  ;;  %v1436_v56 = vpack.c.bf16 %v2816_v3, %v2816_v3 }
 0x3ac   : > { %v1396_v8 = vpop.f32.mrf.mxu3 }
 0x3ad   : > { %v1531_v10 = vpack.c.b16 %v1521_v7, %v1520_v6  ;;  %v1397_v14 = vadd.f32 %v2844_v42, %v1396_v8  ;;  %v1480_v6 = vunpack.c.l.b16 %v1432_v34  ;;  %v1481_v7 = vunpack.c.l.b16 %v1433_v12 }
 0x3af   : > { %1544 = vrot.lane.b32.xlu1 %v1531_v10, %s2337_s21  ;;  %v1418_v58 = vmax.f32 %v1397_v14, 0.0  ;;  %v1491_v29 = vpack.c.b16 %v1481_v7, %v1480_v6 }
 0x3b1   : > { %v1450_v16 = vpack.c.bf16 %v1418_v58, %v1418_v58 }
 0x3b3   : > { %v1522_v22 = vunpack.c.l.b16 %v1450_v16  ;;  %v1484_v16 = vunpack.c.l.b16 %v1436_v56 }
 0x3b4   : > { %v1398_v31 = vpop.f32.mrf.mxu3 }
 0x3b5   : > { %v1399_v15 = vadd.f32 %v2844_v42, %v1398_v31  ;;  %v1437_v31 = vpack.c.bf16 %v2819_v5, %v2819_v5 }
 0x3b7   : > { %v1419_v26 = vmax.f32 %v1399_v15, 0.0 }
 0x3b9   : > { %v1451_v17 = vpack.c.bf16 %v1419_v26, %v1419_v26  ;;  %v1535_v19 = vpop.permute.xlu2 %1534  ;;  %v1485_v26 = vunpack.c.l.b16 %v1437_v31 }
 0x3ba   : > { %v1552_v23 = vsel %vm1199_vm3, %v1486_v51, %v1535_v19 }
 0x3bb   : > { %v1523_v13 = vunpack.c.l.b16 %v1451_v17  ;;  %2047 = vmatmul.msk.bf16.vlgmr.msrb.gmra.mxu2 %vm1626_vm0, %v1552_v23  ;;  %v1493_v19 = vpack.c.b16 %v1485_v26, %v1484_v16 }
 0x3bd   : > { %v1532_v28 = vpack.c.b16 %v1523_v13, %v1522_v22 }
 0x3bf   : > { %1546 = vrot.lane.b32.xlu2 %v1532_v28, %s2337_s21 }
 0x3ce   : > { %v1401_v39 = vpop.f32.mrf.mxu3 }
 0x3cf   : > { %v1402_v41 = vadd.f32 %v2844_v42, %v1401_v39 }
 0x3d1   : > { %v1420_v44 = vmax.f32 %v1402_v41, 0.0 }
 0x3d3   : > { %v1452_v47 = vpack.c.bf16 %v1420_v44, %v1420_v44 }
 0x3d5   : > { %v1524_v24 = vunpack.c.l.b16 %v1452_v47 }
 0x3d6   : > { %v1403_v46 = vpop.f32.mrf.mxu3 }
 0x3d7   : > { %v1404_v45 = vadd.f32 %v2844_v42, %v1403_v46  ;;  %v1478_v42 = vunpack.c.l.b16 %v1430_v53 }
 0x3d9   : > { %v1421_v48 = vmax.f32 %v1404_v45, 0.0  ;;  %v1490_v18 = vpack.c.b16 %v1479_v54, %v1478_v42 }
 0x3db   : > { %v1453_v49 = vpack.c.bf16 %v1421_v48, %v1421_v48 }
 0x3dd   : > { %v1525_v51 = vunpack.c.l.b16 %v1453_v49 }
 0x3df   : > { %v1533_v25 = vpack.c.b16 %v1525_v51, %v1524_v24 }
 0x3e1   : > { %1548 = vrot.lane.b32.xlu0 %v1533_v25, %s2337_s21  ;;  %v1537_v55 = vpop.permute.xlu0 %1536  ;;  %s435_s21 = sand.u32 1, %s2318_s18  }
 0x3e2   : > { %v1555_v57 = vsel %vm1199_vm3, %v1487_v35, %v1537_v55  ;;  %s1849_s15 = sshll.u32 %s435_s21, 6  ;;  %s1725_s12 = scalar_lea.sflag [#allocation4], %s435_s21 }
 0x3e3   : > { %2048 = vmatmul.msk.bf16.gmra.mxu2 %vm1626_vm0, %v1555_v57  ;;  %s2940_s16 = scalar_lea.vmem [#allocation3], %s1849_s15 }
 0x3e4   : > { %s1737_s14 = sshll.u32 %s2940_s16, 4  ;;  %s1738_s14 = int_to_ptr.vmem [resolvable:$true] %s1737_s14 }
 0x3e9   : > { %v1541_v8 = vpop.permute.xlu2 %1540 }
 0x3ea   : > { %v1561_v10 = vsel %vm1199_vm3, %v1489_v36, %v1541_v8 }
 0x3f1   : > { %v1539_v60 = vpop.permute.xlu1 %1538 }
 0x3f2   : > { %v1558_v0 = vsel %vm1199_vm3, %v1488_v27, %v1539_v60 }
 0x3f3   : > { %2049 = vmatmul.msk.bf16.gmra.mxu2 %vm1626_vm0, %v1558_v0 }
 0x403   : > { %2050 = vmatmul.msk.bf16.gmra.mxu2 %vm1626_vm0, %v1561_v10 }
 0x411   : > { %v1543_v32 = vpop.permute.xlu0 %1542 }
 0x412   : > { %v1564_v14 = vsel %vm1199_vm3, %v1490_v18, %v1543_v32 }
 0x413   : > { %2051 = vmatmul.msk.bf16.gmra.mxu2 %vm1626_vm0, %v1564_v14 }
 0x419   : > { %v1547_v15 = vpop.permute.xlu2 %1546 }
 0x41a   : > { %v1570_v17 = vsel %vm1199_vm3, %v1492_v9, %v1547_v15 }
 0x421   : > { %v1545_v58 = vpop.permute.xlu1 %1544 }
 0x422   : > { %v1567_v11 = vsel %vm1199_vm3, %v1491_v29, %v1545_v58 }
 0x423   : > { %2052 = vmatmul.msk.bf16.gmra.mxu2 %vm1626_vm0, %v1567_v11 }
 0x433   : > { %2053 = vmatmul.msk.bf16.gmra.mxu2 %vm1626_vm0, %v1570_v17 }
 0x43e   : > { %v1652_v20 = vpop.f32.mrf.mxu2 }
 0x43f   : > { %v1653_v23 = vadd.f32 %v2223_v21, %v1652_v20 }
 0x446   : > { %v1654_v3 = vpop.f32.mrf.mxu2 }
 0x447   : > { %v1655_v22 = vadd.f32 %v2223_v21, %v1654_v3 }
 0x449   : > { %v2109_v5 = vpack.c.bf16 %v1655_v22, %v1653_v23 }
 0x44b   : > { %2110 = vst [vmem:[%s2940_s16] sm:$0xff] %v2109_v5  }
 0x453   : > { %v1549_v13 = vpop.permute.xlu0 %1548 }
 0x454   : > { %v1573_v28 = vsel %vm1199_vm3, %v1493_v19, %v1549_v13 }
 0x455   : > { %2054 = vmatmul.msk.bf16.gmra.mxu2 %vm1626_vm0, %v1573_v28 }
 0x466   : > { %v1657_v59 = vpop.f32.mrf.mxu2 }
 0x467   : > { %v1658_v35 = vadd.f32 %v2223_v21, %v1657_v59 }
 0x46e   : > { %v1659_v30 = vpop.f32.mrf.mxu2 }
 0x46f   : > { %v1660_v61 = vadd.f32 %v2223_v21, %v1659_v30 }
 0x471   : > { %v2114_v33 = vpack.c.bf16 %v1660_v61, %v1658_v35 }
 0x473   : > { %2146 = vst [vmem:[%s2940_s16 + $0x8] sm:$0xff] %v2114_v33  }
 0x476   : > { %v1662_v2 = vpop.f32.mrf.mxu2 }
 0x477   : > { %v1663_v36 = vadd.f32 %v2223_v21, %v1662_v2 }
 0x47e   : > { %v1664_v37 = vpop.f32.mrf.mxu2 }
 0x47f   : > { %v1665_v38 = vadd.f32 %v2223_v21, %v1664_v37 }
 0x481   : > { %v2119_v50 = vpack.c.bf16 %v1665_v38, %v1663_v36 }
 0x483   : > { %2147 = vst [vmem:[%s2940_s16 + $0x10] sm:$0xff] %v2119_v50  }
 0x486   : > { %v1667_v39 = vpop.f32.mrf.mxu2 }
 0x487   : > { %v1668_v43 = vadd.f32 %v2223_v21, %v1667_v39 }
 0x48e   : > { %v1669_v40 = vpop.f32.mrf.mxu2 }
 0x48f   : > { %v1670_v27 = vadd.f32 %v2223_v21, %v1669_v40 }
 0x491   : > { %v2124_v41 = vpack.c.bf16 %v1670_v27, %v1668_v43 }
 0x493   : > { %2148 = vst [vmem:[%s2940_s16 + $0x18] sm:$0xff] %v2124_v41  }
 0x496   : > { %v1672_v44 = vpop.f32.mrf.mxu2 }
 0x497   : > { %v1673_v45 = vadd.f32 %v2223_v21, %v1672_v44 }
 0x49e   : > { %v1674_v46 = vpop.f32.mrf.mxu2 }
 0x49f   : > { %v1675_v47 = vadd.f32 %v2223_v21, %v1674_v46 }
 0x4a1   : > { %v2129_v48 = vpack.c.bf16 %v1675_v47, %v1673_v45 }
 0x4a3   : > { %2149 = vst [vmem:[%s2940_s16 + $0x20] sm:$0xff] %v2129_v48  }
 0x4a6   : > { %v1677_v49 = vpop.f32.mrf.mxu2 }
 0x4a7   : > { %v1678_v51 = vadd.f32 %v2223_v21, %v1677_v49 }
 0x4ae   : > { %v1679_v24 = vpop.f32.mrf.mxu2 }
 0x4af   : > { %v1680_v25 = vadd.f32 %v2223_v21, %v1679_v24 }
 0x4b1   : > { %v2134_v55 = vpack.c.bf16 %v1680_v25, %v1678_v51 }
 0x4b3   : > { %2150 = vst [vmem:[%s2940_s16 + $0x28] sm:$0xff] %v2134_v55  }
 0x4b6   : > { %v1682_v57 = vpop.f32.mrf.mxu2 }
 0x4b7   : > { %v1683_v53 = vadd.f32 %v2223_v21, %v1682_v57 }
 0x4be   : > { %v1684_v52 = vpop.f32.mrf.mxu2 }
 0x4bf   : > { %v1685_v42 = vadd.f32 %v2223_v21, %v1684_v52 }
 0x4c1   : > { %v2139_v54 = vpack.c.bf16 %v1685_v42, %v1683_v53 }
 0x4c3   : > { %2151 = vst [vmem:[%s2940_s16 + $0x30] sm:$0xff] %v2139_v54  }
 0x4d8   : > { %v1687_v18 = vpop.f32.mrf.mxu2 }
 0x4d9   : > { %v1688_v62 = vadd.f32 %v2223_v21, %v1687_v18 }
 0x4e0   : > { %v1689_v60 = vpop.f32.mrf.mxu2 }
 0x4e1   : > { %v1690_v63 = vadd.f32 %v2223_v21, %v1689_v60 }
 0x4e3   : > { %v2144_v0 = vpack.c.bf16 %v1690_v63, %v1688_v62 }
 0x4e5   : > { %2152 = vst [vmem:[%s2940_s16 + $0x38] sm:$0xff] %v2144_v0  }
 0x4e6   : > { %2283 = shalt.err (!%p2280_p5)
}
 0x4e7   : > { %s2339_s21 = smov 64   ;;  %s2340_s16 = smov 4  }
 0x4e8   : > { %2159 = dma.vmem_to_hbm [thread:$0]  (%p2441_p4), %s1738_s14, 1024, %s1740_s24, %s1725_s12, %s2339_s21, %s2339_s21, %s2340_s16  }
 0x4e9 PF: > { %p2165_p6 = scmp.ge.s32.totalorder %s2334_s22, 2  ;;  %s1754_s28 = sand.u32 1, %s2314_s17  }
 0x4ea   : > { %s1755_s20 = scalar_lea.sflag [#allocation4], %s1754_s28 }
 0x4eb   : > { %p2162_p7 = pnand %p2165_p6, %p2448_p8 }
 0x4ed   : > { %p2163_p9 = pneg %p2162_p7 }
 0x4ef   : > { %2309 = dma.done.wait (%p2163_p9), %s1755_s20, 1024  }
 0x4f0   : > { %2311 = vsyncadd (%p2163_p9), %s1755_s20, 4294966272  ;;  %s24_s22 = sadd.s32 1, %s2334_s22   ;;  %s3010_s30 = sld [smem:[#allocation8_spill]] }
 0x4f1   : > { %p21_p10 = scmp.ge.s32.totalorder %s24_s22, 4   ;;  %s3011_s20 = sld [smem:[#allocation6_spill]] }
 0x4f2   : > { %s3012_s21 = sld [smem:[#allocation7_spill]]  ;;  %s3013_s17 = smov %s2318_s18 }
 0x4f3   : > { %s3014_s18 = smov %s2322_s19  ;;  %23 = sbr.rel (!%p21_p10) target bundleno = 4 (0x4), region = 113 }
 0x4f6   : > { %s3015_s19 = smov %s3010_s30 }
 0x4f8   :  { %1761 = vsyncpa [#allocation4], 1 }
 0x4f9   :  { %1763 = vsyncpa [#allocation4 + $0x1], 1 }

</bundles_post_ra>
